<compile_context>
chip_gen: v5e
topology: v5e:2x2
jax: 0.10.0
libtpu: 0.0.40
codegen_flags: <defaults>
</compile_context>

<pallas_src>
import functools

import jax
import jax.numpy as jnp
import numpy as np
from jax import lax
from jax.experimental import pallas as pl
from jax.experimental.pallas import tpu as pltpu


def _gelu(v):
    # TODO(synk): nn.GELU() default is the exact erf form; tanh approximation
    # used here for guaranteed Mosaic lowering (matches to ~1e-3).
    c = jnp.float32(0.7978845608028654)  # sqrt(2/pi)
    return 0.5 * v * (1.0 + jnp.tanh(c * (v + 0.044715 * v * v * v)))


# ---------------------------------------------------------------------------
# Wrapper-side weight preparation.  Every fusion below is mathematically
# exact (pure linear-algebra identities computed in f32, cast to bf16 once).
# ---------------------------------------------------------------------------
def _banded_conv_weight(w, L):
    """(K, Cin, Cout) Conv1d taps -> (L*Cin, L*Cout) block-banded matrix.

    h_flat(B, L*Cin) @ band == Conv1d(padding='same', stride=1) applied
    per-sequence, including the zero padding at both sequence ends (absent
    rows of the band encode the zeros)."""
    K, Cin, Cout = w.shape
    pad_l = (K - 1) // 2                       # PyTorch 'same' left pad
    Wb = jnp.zeros((L, Cin, L, Cout), jnp.float32)
    for k in range(K):
        # output position l_out reads input position l_in = l_out + (k - pad_l)
        sel = jnp.eye(L, L, k=-(k - pad_l), dtype=jnp.float32)   # sel[l_in, l_out]
        Wb = Wb + sel[:, None, :, None] * w[k].astype(jnp.float32)[None, :, None, :]
    return Wb.reshape(L * Cin, L * Cout)


def _tiled_bias(b, L):
    # flat-output index is l*Cout + co  ->  bias repeats per position
    return jnp.tile(b.reshape(1, -1).astype(jnp.float32), (1, L))   # (1, L*Cout)


def prepare_fused_weights(params, L, lane=128):
    I = params["w1a"].shape[2]
    num_labels = params["wf"].shape[1]

    B1a = _banded_conv_weight(params["w1a"], L); c1a = _tiled_bias(params["b1a"], L)
    B1b = _banded_conv_weight(params["w1b"], L); c1b = _tiled_bias(params["b1b"], L)
    B2a = _banded_conv_weight(params["w2a"], L); c2a = _tiled_bias(params["b2a"], L)
    B2b = _banded_conv_weight(params["w2b"], L); c2b = _tiled_bias(params["b2b"], L)

    # Fusion 1 (exact): conv1's 2nd Conv1d ∘ conv2's 1st Conv1d (adjacent,
    # no nonlinearity between them), composed as banded matrices in f32.
    Bmid = B1a.dtype.type(0) + B1b @ B2a                  # (L*I, L*I)
    cmid = c1b @ B2a + c2a                                # (1, L*I)

    # Fusion 2 (exact): conv2's 2nd Conv1d ∘ mean-pool over L ∘ MLP Linear1.
    Wpool = jnp.tile(params["wm1"].astype(jnp.float32), (L, 1)) / jnp.float32(L)
    Wbig = B2b @ Wpool                                    # (L*I, I)
    bbig = c2b @ Wpool + params["bm1"].reshape(1, -1).astype(jnp.float32)

    # Fusion 3 (exact): fold LayerNorm gamma (bias=False) into final linear.
    wf_scaled = params["gamma"].reshape(-1, 1).astype(jnp.float32) * \
        params["wf"].astype(jnp.float32)                  # (I, num_labels)
    nl_pad = ((num_labels + lane - 1) // lane) * lane     # lane-dense output
    wf_pad = jnp.zeros((I, nl_pad), jnp.float32).at[:, :num_labels].set(wf_scaled)

    bf16 = jnp.bfloat16
    return dict(
        w1=B1a.astype(bf16), b1=c1a,                      # conv1a
        w2=Bmid.astype(bf16), b2=cmid,                    # conv1b ∘ conv2a
        w3=Wbig.astype(bf16), b3=bbig,                    # conv2b ∘ pool ∘ mlp1
        wm2=params["wm2"].astype(bf16),
        bm2=params["bm2"].reshape(1, -1).astype(jnp.float32),
        wf=wf_pad.astype(bf16),
        nl_pad=nl_pad, num_labels=num_labels,
    )


# ---------------------------------------------------------------------------
# Kernel: one grid step = TB batch elements, five lane-dense matmuls.
# ---------------------------------------------------------------------------
def head_kernel(x_ref, w1_ref, b1_ref, w2_ref, b2_ref, w3_ref, b3_ref,
                wm2_ref, bm2_ref, wf_ref, out_ref):
    x = x_ref[...]                                              # (TB, L*H) bf16

    # conv1a + GELU
    h = jnp.dot(x, w1_ref[...], preferred_element_type=jnp.float32) + b1_ref[...]
    h = _gelu(h)                                                # (TB, L*I) f32

    # (conv1b ∘ conv2a) + GELU
    h = jnp.dot(h.astype(jnp.bfloat16), w2_ref[...],
                preferred_element_type=jnp.float32) + b2_ref[...]
    h = _gelu(h)                                                # (TB, L*I)

    # conv2b ∘ mean-pool ∘ mlp Linear1, then GELU
    h = jnp.dot(h.astype(jnp.bfloat16), w3_ref[...],
                preferred_element_type=jnp.float32) + b3_ref[...]
    h = _gelu(h)                                                # (TB, I)

    # mlp Linear2
    h = jnp.dot(h.astype(jnp.bfloat16), wm2_ref[...],
                preferred_element_type=jnp.float32) + bm2_ref[...]

    # LayerNorm(intermediate, bias=False), eps=1e-5; gamma folded into wf.
    mu = jnp.mean(h, axis=-1, keepdims=True)
    var = jnp.mean((h - mu) ** 2, axis=-1, keepdims=True)
    h = (h - mu) * lax.rsqrt(var + jnp.float32(1e-5))

    # final Linear(I, num_labels_padded, bias=False) -- lane-dense output.
    out = jnp.dot(h.astype(jnp.bfloat16), wf_ref[...],
                  preferred_element_type=jnp.float32)
    out_ref[...] = out.astype(out_ref.dtype)


def _choose_tb(B):
    b8 = ((B + 7) // 8) * 8                   # sublane multiple
    # Small batches: a single grid step (no step that is mostly zero padding,
    # no duplicated weight DMAs).  Large batches: 256-row blocks so the matmul
    # M dim fills the MXU on v6e/v7x and the grid can spread across cores.
    return b8 if b8 <= 256 else 256


@functools.partial(jax.jit, static_argnames=("tb",))
def lightweight_cnn_head(x, params, *, tb=None):
    B, L, H = x.shape
    I = params["wm1"].shape[0]

    fw = prepare_fused_weights(params, L)
    nl_pad, num_labels = fw["nl_pad"], fw["num_labels"]

    if tb is None:
        tb = _choose_tb(B)
    b_pad = ((B + tb - 1) // tb) * tb

    xp = x if b_pad == B else jnp.concatenate(
        [x, jnp.zeros((b_pad - B, L, H), x.dtype)], axis=0)
    # bf16 input DMA (halves HBM->VMEM traffic; matmul inputs are bf16 anyway)
    xp = xp.reshape(b_pad, L * H).astype(jnp.bfloat16)

    def full(a):
        nd = a.ndim
        # Grid-invariant blocks.  With long grids one would also pass
        # pipeline_mode=pl.Buffered(1) here (constant index_map => single buffer).
        return pl.BlockSpec(a.shape, lambda b, nd=nd: (0,) * nd)

    operands = (xp, fw["w1"], fw["b1"], fw["w2"], fw["b2"], fw["w3"], fw["b3"],
                fw["wm2"], fw["bm2"], fw["wf"])
    in_specs = [pl.BlockSpec((tb, L * H), lambda b: (b, 0))] + \
               [full(a) for a in operands[1:]]

    out = pl.pallas_call(
        head_kernel,
        out_shape=jax.ShapeDtypeStruct((b_pad, nl_pad), jnp.float32),
        grid_spec=pltpu.PrefetchScalarGridSpec(
            num_scalar_prefetch=0,
            grid=(b_pad // tb,),
            in_specs=in_specs,
            out_specs=pl.BlockSpec((tb, nl_pad), lambda b: (b, 0)),
        ),
        compiler_params=pltpu.CompilerParams(
            dimension_semantics=("parallel",),
            vmem_limit_bytes=32 * 1024 * 1024),   # well within v7x's 64 MiB
    )(*operands)

    return out[:B, :num_labels]


# ---------------------------------------------------------------------------
# References.
# ---------------------------------------------------------------------------
def reference_fused_math(x, params):
    """Pure-JAX mirror of the exact kernel math (same fused bf16 weights)."""
    B, L, H = x.shape
    fw = prepare_fused_weights(params, L)
    bf16 = jnp.bfloat16
    h = x.reshape(B, L * H).astype(bf16)
    h = jnp.dot(h, fw["w1"], preferred_element_type=jnp.float32) + fw["b1"]
    h = _gelu(h)
    h = jnp.dot(h.astype(bf16), fw["w2"], preferred_element_type=jnp.float32) + fw["b2"]
    h = _gelu(h)
    h = jnp.dot(h.astype(bf16), fw["w3"], preferred_element_type=jnp.float32) + fw["b3"]
    h = _gelu(h)
    h = jnp.dot(h.astype(bf16), fw["wm2"], preferred_element_type=jnp.float32) + fw["bm2"]
    mu = h.mean(-1, keepdims=True)
    var = ((h - mu) ** 2).mean(-1, keepdims=True)
    h = (h - mu) * lax.rsqrt(var + jnp.float32(1e-5))
    out = jnp.dot(h.astype(bf16), fw["wf"], preferred_element_type=jnp.float32)
    return out[:, :fw["num_labels"]]


def reference_head_f32(x, p):
    """Exact-f32 module semantics (per-tap Conv1d, unfused)."""
    def conv(h, w, b):
        L, K = h.shape[1], w.shape[0]
        pad_l = (K - 1) // 2
        hp = jnp.pad(h, ((0, 0), (pad_l, (K - 1) - pad_l), (0, 0)))
        acc = jnp.zeros((h.shape[0], L, w.shape[2]), jnp.float32)
        for k in range(K):
            acc = acc + jnp.einsum("blc,cd->bld", hp[:, k:k + L], w[k],
                                   preferred_element_type=jnp.float32)
        return acc + b

    h = x.astype(jnp.float32)
    h = conv(h, p["w1a"], p["b1a"]); h = _gelu(h); h = conv(h, p["w1b"], p["b1b"])
    h = conv(h, p["w2a"], p["b2a"]); h = _gelu(h); h = conv(h, p["w2b"], p["b2b"])
    h = h.mean(axis=1)
    h = h @ p["wm1"] + p["bm1"]; h = _gelu(h); h = h @ p["wm2"] + p["bm2"]
    mu = h.mean(-1, keepdims=True)
    var = ((h - mu) ** 2).mean(-1, keepdims=True)
    h = (h - mu) * lax.rsqrt(var + jnp.float32(1e-5)) * p["gamma"]
    return h @ p["wf"]


def make_params(key, hidden_size, intermediate_size, kernel_size, num_labels):
    ks = jax.random.split(key, 16)
    n = lambda k, shape, scale: (scale * jax.random.normal(k, shape)).astype(jnp.float32)
    H, I, K = hidden_size, intermediate_size, kernel_size
    return {
        # CNN 1 (Conv1d H->I, Conv1d I->I), weights as (K, Cin, Cout)
        "w1a": n(ks[0], (K, H, I), 0.10), "b1a": n(ks[1], (1, I), 0.02),
        "w1b": n(ks[2], (K, I, I), 0.08), "b1b": n(ks[3], (1, I), 0.02),
        # CNN 2 (Conv1d I->I, Conv1d I->I)
        "w2a": n(ks[4], (K, I, I), 0.08), "b2a": n(ks[5], (1, I), 0.02),
        "w2b": n(ks[6], (K, I, I), 0.08), "b2b": n(ks[7], (1, I), 0.02),
        # MLP (Linear I->I, Linear I->I)
        "wm1": n(ks[8], (I, I), 0.10), "bm1": n(ks[9], (1, I), 0.02),
        "wm2": n(ks[10], (I, I), 0.10), "bm2": n(ks[11], (1, I), 0.02),
        # LayerNorm weight (bias=False)
        "gamma": (1.0 + 0.05 * jax.random.normal(ks[12], (1, I))).astype(jnp.float32),
        # final Linear (bias=False)
        "wf": n(ks[13], (I, num_labels), 0.10),
    }


if __name__ == "__main__":
    B, L = 10, 8                # batch (exercises batch padding), seq len
    hidden_size = 32            # config.hidden_size
    intermediate_size = 64
    kernel_size = 3
    num_labels = 5              # config.num_labels

    key = jax.random.PRNGKey(0)
    kx, kp = jax.random.split(key)
    x = jax.random.normal(kx, (B, L, hidden_size), dtype=jnp.float32)
    params = make_params(kp, hidden_size, intermediate_size, kernel_size, num_labels)

    out = lightweight_cnn_head(x, params)       # single grid step, TB=16
    out = jax.block_until_ready(out)
    assert out.shape == (B, num_labels)

    # Tight check: pure-JAX mirror of the kernel's fused bf16 math.
    ref_kernel_math = reference_fused_math(x, params)
    np.testing.assert_allclose(np.asarray(out), np.asarray(ref_kernel_math),
                               rtol=2e-3, atol=2e-3)

    # Loose check: exact-f32 module semantics (bf16 matmul inputs + exact
    # offline fusions are the only sources of deviation).
    ref_f32 = reference_head_f32(x, params)
    np.testing.assert_allclose(np.asarray(out), np.asarray(ref_f32),
                               rtol=5e-2, atol=5e-2)

    print("KERNEL_OK")
</pallas_src>

<mosaic_0001>
module attributes {stable_mosaic.version = 11 : i64} {
  func.func @head_kernel(%arg0: i32, %arg1: memref<16x256xbf16, #tpu.memory_space<vmem>>, %arg2: memref<256x512xbf16, #tpu.memory_space<vmem>>, %arg3: memref<1x512xf32, #tpu.memory_space<vmem>>, %arg4: memref<512x512xbf16, #tpu.memory_space<vmem>>, %arg5: memref<1x512xf32, #tpu.memory_space<vmem>>, %arg6: memref<512x64xbf16, #tpu.memory_space<vmem>>, %arg7: memref<1x64xf32, #tpu.memory_space<vmem>>, %arg8: memref<64x64xbf16, #tpu.memory_space<vmem>>, %arg9: memref<1x64xf32, #tpu.memory_space<vmem>>, %arg10: memref<64x128xbf16, #tpu.memory_space<vmem>>, %arg11: memref<16x128xf32, #tpu.memory_space<vmem>>) attributes {dimension_semantics = [#tpu.dimension_semantics<parallel>], iteration_bounds = array<i64: 1>, scalar_prefetch = 0 : i64, scratch_operands = 0 : i64, tpu.core_type = #tpu.core_type<tc>, window_params = [{transform_indices = @transform_0, window_bounds = array<i64: 16, 256>}, {pipeline_mode = #tpu.pipeline_mode<synchronous>, transform_indices = @transform_1, window_bounds = array<i64: 256, 512>}, {pipeline_mode = #tpu.pipeline_mode<synchronous>, transform_indices = @transform_2, window_bounds = array<i64: 1, 512>}, {pipeline_mode = #tpu.pipeline_mode<synchronous>, transform_indices = @transform_3, window_bounds = array<i64: 512, 512>}, {pipeline_mode = #tpu.pipeline_mode<synchronous>, transform_indices = @transform_4, window_bounds = array<i64: 1, 512>}, {pipeline_mode = #tpu.pipeline_mode<synchronous>, transform_indices = @transform_5, window_bounds = array<i64: 512, 64>}, {pipeline_mode = #tpu.pipeline_mode<synchronous>, transform_indices = @transform_6, window_bounds = array<i64: 1, 64>}, {pipeline_mode = #tpu.pipeline_mode<synchronous>, transform_indices = @transform_7, window_bounds = array<i64: 64, 64>}, {pipeline_mode = #tpu.pipeline_mode<synchronous>, transform_indices = @transform_8, window_bounds = array<i64: 1, 64>}, {pipeline_mode = #tpu.pipeline_mode<synchronous>, transform_indices = @transform_9, window_bounds = array<i64: 64, 128>}, {transform_indices = @transform_10, window_bounds = array<i64: 16, 128>}]} {
    %c0 = arith.constant 0 : index
    %c0_0 = arith.constant 0 : index
    %0 = vector.load %arg1[%c0, %c0_0] : memref<16x256xbf16, #tpu.memory_space<vmem>>, vector<16x256xbf16>
    %c0_1 = arith.constant 0 : index
    %c0_2 = arith.constant 0 : index
    %1 = vector.load %arg2[%c0_1, %c0_2] : memref<256x512xbf16, #tpu.memory_space<vmem>>, vector<256x512xbf16>
    %cst = arith.constant dense<0.000000e+00> : vector<16x512xf32>
    %2 = tpu.matmul %0, %1, %cst {dimension_numbers = #tpu.dot_dimension_numbers<[1], [0], [0], [1], [0, 0, 1, 1], [], []>} : vector<16x256xbf16>, vector<256x512xbf16>, vector<16x512xf32> -> vector<16x512xf32>
    %c0_3 = arith.constant 0 : index
    %c0_4 = arith.constant 0 : index
    %3 = vector.load %arg3[%c0_3, %c0_4] : memref<1x512xf32, #tpu.memory_space<vmem>>, vector<1x512xf32>
    %4 = vector.broadcast %3 : vector<1x512xf32> to vector<16x512xf32>
    %5 = arith.addf %2, %4 : vector<16x512xf32>
    %cst_5 = arith.constant 5.000000e-01 : f32
    %6 = vector.broadcast %cst_5 : f32 to vector<16x512xf32>
    %7 = arith.mulf %6, %5 : vector<16x512xf32>
    %cst_6 = arith.constant 4.471500e-02 : f32
    %8 = vector.broadcast %cst_6 : f32 to vector<16x512xf32>
    %9 = arith.mulf %8, %5 : vector<16x512xf32>
    %10 = arith.mulf %9, %5 : vector<16x512xf32>
    %11 = arith.mulf %10, %5 : vector<16x512xf32>
    %12 = arith.addf %5, %11 : vector<16x512xf32>
    %cst_7 = arith.constant 0.797884583 : f32
    %13 = vector.broadcast %cst_7 : f32 to vector<16x512xf32>
    %14 = arith.mulf %13, %12 : vector<16x512xf32>
    %15 = math.tanh %14 : vector<16x512xf32>
    %cst_8 = arith.constant 1.000000e+00 : f32
    %16 = vector.broadcast %cst_8 : f32 to vector<16x512xf32>
    %17 = arith.addf %16, %15 : vector<16x512xf32>
    %18 = arith.mulf %7, %17 : vector<16x512xf32>
    %19 = arith.truncf %18 : vector<16x512xf32> to vector<16x512xbf16>
    %c0_9 = arith.constant 0 : index
    %c0_10 = arith.constant 0 : index
    %20 = vector.load %arg4[%c0_9, %c0_10] : memref<512x512xbf16, #tpu.memory_space<vmem>>, vector<512x512xbf16>
    %cst_11 = arith.constant dense<0.000000e+00> : vector<16x512xf32>
    %21 = tpu.matmul %19, %20, %cst_11 {dimension_numbers = #tpu.dot_dimension_numbers<[1], [0], [0], [1], [0, 0, 1, 1], [], []>} : vector<16x512xbf16>, vector<512x512xbf16>, vector<16x512xf32> -> vector<16x512xf32>
    %c0_12 = arith.constant 0 : index
    %c0_13 = arith.constant 0 : index
    %22 = vector.load %arg5[%c0_12, %c0_13] : memref<1x512xf32, #tpu.memory_space<vmem>>, vector<1x512xf32>
    %23 = vector.broadcast %22 : vector<1x512xf32> to vector<16x512xf32>
    %24 = arith.addf %21, %23 : vector<16x512xf32>
    %cst_14 = arith.constant 5.000000e-01 : f32
    %25 = vector.broadcast %cst_14 : f32 to vector<16x512xf32>
    %26 = arith.mulf %25, %24 : vector<16x512xf32>
    %cst_15 = arith.constant 4.471500e-02 : f32
    %27 = vector.broadcast %cst_15 : f32 to vector<16x512xf32>
    %28 = arith.mulf %27, %24 : vector<16x512xf32>
    %29 = arith.mulf %28, %24 : vector<16x512xf32>
    %30 = arith.mulf %29, %24 : vector<16x512xf32>
    %31 = arith.addf %24, %30 : vector<16x512xf32>
    %cst_16 = arith.constant 0.797884583 : f32
    %32 = vector.broadcast %cst_16 : f32 to vector<16x512xf32>
    %33 = arith.mulf %32, %31 : vector<16x512xf32>
    %34 = math.tanh %33 : vector<16x512xf32>
    %cst_17 = arith.constant 1.000000e+00 : f32
    %35 = vector.broadcast %cst_17 : f32 to vector<16x512xf32>
    %36 = arith.addf %35, %34 : vector<16x512xf32>
    %37 = arith.mulf %26, %36 : vector<16x512xf32>
    %38 = arith.truncf %37 : vector<16x512xf32> to vector<16x512xbf16>
    %c0_18 = arith.constant 0 : index
    %c0_19 = arith.constant 0 : index
    %39 = vector.load %arg6[%c0_18, %c0_19] : memref<512x64xbf16, #tpu.memory_space<vmem>>, vector<512x64xbf16>
    %cst_20 = arith.constant dense<0.000000e+00> : vector<16x64xf32>
    %40 = tpu.matmul %38, %39, %cst_20 {dimension_numbers = #tpu.dot_dimension_numbers<[1], [0], [0], [1], [0, 0, 1, 1], [], []>} : vector<16x512xbf16>, vector<512x64xbf16>, vector<16x64xf32> -> vector<16x64xf32>
    %c0_21 = arith.constant 0 : index
    %c0_22 = arith.constant 0 : index
    %41 = vector.load %arg7[%c0_21, %c0_22] : memref<1x64xf32, #tpu.memory_space<vmem>>, vector<1x64xf32>
    %42 = vector.broadcast %41 : vector<1x64xf32> to vector<16x64xf32>
    %43 = arith.addf %40, %42 : vector<16x64xf32>
    %cst_23 = arith.constant 5.000000e-01 : f32
    %44 = vector.broadcast %cst_23 : f32 to vector<16x64xf32>
    %45 = arith.mulf %44, %43 : vector<16x64xf32>
    %cst_24 = arith.constant 4.471500e-02 : f32
    %46 = vector.broadcast %cst_24 : f32 to vector<16x64xf32>
    %47 = arith.mulf %46, %43 : vector<16x64xf32>
    %48 = arith.mulf %47, %43 : vector<16x64xf32>
    %49 = arith.mulf %48, %43 : vector<16x64xf32>
    %50 = arith.addf %43, %49 : vector<16x64xf32>
    %cst_25 = arith.constant 0.797884583 : f32
    %51 = vector.broadcast %cst_25 : f32 to vector<16x64xf32>
    %52 = arith.mulf %51, %50 : vector<16x64xf32>
    %53 = math.tanh %52 : vector<16x64xf32>
    %cst_26 = arith.constant 1.000000e+00 : f32
    %54 = vector.broadcast %cst_26 : f32 to vector<16x64xf32>
    %55 = arith.addf %54, %53 : vector<16x64xf32>
    %56 = arith.mulf %45, %55 : vector<16x64xf32>
    %57 = arith.truncf %56 : vector<16x64xf32> to vector<16x64xbf16>
    %c0_27 = arith.constant 0 : index
    %c0_28 = arith.constant 0 : index
    %58 = vector.load %arg8[%c0_27, %c0_28] : memref<64x64xbf16, #tpu.memory_space<vmem>>, vector<64x64xbf16>
    %cst_29 = arith.constant dense<0.000000e+00> : vector<16x64xf32>
    %59 = tpu.matmul %57, %58, %cst_29 {dimension_numbers = #tpu.dot_dimension_numbers<[1], [0], [0], [1], [0, 0, 1, 1], [], []>} : vector<16x64xbf16>, vector<64x64xbf16>, vector<16x64xf32> -> vector<16x64xf32>
    %c0_30 = arith.constant 0 : index
    %c0_31 = arith.constant 0 : index
    %60 = vector.load %arg9[%c0_30, %c0_31] : memref<1x64xf32, #tpu.memory_space<vmem>>, vector<1x64xf32>
    %61 = vector.broadcast %60 : vector<1x64xf32> to vector<16x64xf32>
    %62 = arith.addf %59, %61 : vector<16x64xf32>
    %cst_32 = arith.constant dense<0.000000e+00> : vector<16xf32>
    %63 = vector.multi_reduction <add>, %62, %cst_32 [1] : vector<16x64xf32> to vector<16xf32>
    %64 = vector.shape_cast %63 : vector<16xf32> to vector<16x1xf32>
    %cst_33 = arith.constant 6.400000e+01 : f32
    %65 = vector.broadcast %cst_33 : f32 to vector<16x1xf32>
    %66 = arith.divf %64, %65 : vector<16x1xf32>
    %67 = vector.broadcast %66 : vector<16x1xf32> to vector<16x64xf32>
    %68 = arith.subf %62, %67 : vector<16x64xf32>
    %69 = arith.mulf %68, %68 : vector<16x64xf32>
    %cst_34 = arith.constant dense<0.000000e+00> : vector<16xf32>
    %70 = vector.multi_reduction <add>, %69, %cst_34 [1] : vector<16x64xf32> to vector<16xf32>
    %71 = vector.shape_cast %70 : vector<16xf32> to vector<16x1xf32>
    %cst_35 = arith.constant 6.400000e+01 : f32
    %72 = vector.broadcast %cst_35 : f32 to vector<16x1xf32>
    %73 = arith.divf %71, %72 : vector<16x1xf32>
    %74 = vector.broadcast %66 : vector<16x1xf32> to vector<16x64xf32>
    %75 = arith.subf %62, %74 : vector<16x64xf32>
    %cst_36 = arith.constant 9.99999974E-6 : f32
    %76 = vector.broadcast %cst_36 : f32 to vector<16x1xf32>
    %77 = arith.addf %73, %76 : vector<16x1xf32>
    %78 = math.rsqrt %77 : vector<16x1xf32>
    %79 = vector.broadcast %78 : vector<16x1xf32> to vector<16x64xf32>
    %80 = arith.mulf %75, %79 : vector<16x64xf32>
    %81 = arith.truncf %80 : vector<16x64xf32> to vector<16x64xbf16>
    %c0_37 = arith.constant 0 : index
    %c0_38 = arith.constant 0 : index
    %82 = vector.load %arg10[%c0_37, %c0_38] : memref<64x128xbf16, #tpu.memory_space<vmem>>, vector<64x128xbf16>
    %cst_39 = arith.constant dense<0.000000e+00> : vector<16x128xf32>
    %83 = tpu.matmul %81, %82, %cst_39 {dimension_numbers = #tpu.dot_dimension_numbers<[1], [0], [0], [1], [0, 0, 1, 1], [], []>} : vector<16x64xbf16>, vector<64x128xbf16>, vector<16x128xf32> -> vector<16x128xf32>
    %c0_40 = arith.constant 0 : index
    %c0_41 = arith.constant 0 : index
    %84 = vector.load %arg11[%c0_40, %c0_41] : memref<16x128xf32, #tpu.memory_space<vmem>>, vector<16x128xf32>
    tpu.vector_store %arg11[%c0_40, %c0_41], %83 {strides = array<i32>} : memref<16x128xf32, #tpu.memory_space<vmem>>, vector<16x128xf32>,
    return
  }
  func.func @transform_0(%arg0: i32) -> (i32, i32) {
    %c0_i32 = arith.constant 0 : i32
    %c0_i32_0 = arith.constant 0 : i32
    return %arg0, %c0_i32 : i32, i32
  }
  func.func @transform_1(%arg0: i32) -> (i32, i32) {
    %c0_i32 = arith.constant 0 : i32
    %c0_i32_0 = arith.constant 0 : i32
    %c0_i32_1 = arith.constant 0 : i32
    return %c0_i32, %c0_i32_0 : i32, i32
  }
  func.func @transform_2(%arg0: i32) -> (i32, i32) {
    %c0_i32 = arith.constant 0 : i32
    %c0_i32_0 = arith.constant 0 : i32
    %c0_i32_1 = arith.constant 0 : i32
    return %c0_i32, %c0_i32_0 : i32, i32
  }
  func.func @transform_3(%arg0: i32) -> (i32, i32) {
    %c0_i32 = arith.constant 0 : i32
    %c0_i32_0 = arith.constant 0 : i32
    %c0_i32_1 = arith.constant 0 : i32
    return %c0_i32, %c0_i32_0 : i32, i32
  }
  func.func @transform_4(%arg0: i32) -> (i32, i32) {
    %c0_i32 = arith.constant 0 : i32
    %c0_i32_0 = arith.constant 0 : i32
    %c0_i32_1 = arith.constant 0 : i32
    return %c0_i32, %c0_i32_0 : i32, i32
  }
  func.func @transform_5(%arg0: i32) -> (i32, i32) {
    %c0_i32 = arith.constant 0 : i32
    %c0_i32_0 = arith.constant 0 : i32
    %c0_i32_1 = arith.constant 0 : i32
    return %c0_i32, %c0_i32_0 : i32, i32
  }
  func.func @transform_6(%arg0: i32) -> (i32, i32) {
    %c0_i32 = arith.constant 0 : i32
    %c0_i32_0 = arith.constant 0 : i32
    %c0_i32_1 = arith.constant 0 : i32
    return %c0_i32, %c0_i32_0 : i32, i32
  }
  func.func @transform_7(%arg0: i32) -> (i32, i32) {
    %c0_i32 = arith.constant 0 : i32
    %c0_i32_0 = arith.constant 0 : i32
    %c0_i32_1 = arith.constant 0 : i32
    return %c0_i32, %c0_i32_0 : i32, i32
  }
  func.func @transform_8(%arg0: i32) -> (i32, i32) {
    %c0_i32 = arith.constant 0 : i32
    %c0_i32_0 = arith.constant 0 : i32
    %c0_i32_1 = arith.constant 0 : i32
    return %c0_i32, %c0_i32_0 : i32, i32
  }
  func.func @transform_9(%arg0: i32) -> (i32, i32) {
    %c0_i32 = arith.constant 0 : i32
    %c0_i32_0 = arith.constant 0 : i32
    %c0_i32_1 = arith.constant 0 : i32
    return %c0_i32, %c0_i32_0 : i32, i32
  }
  func.func @transform_10(%arg0: i32) -> (i32, i32) {
    %c0_i32 = arith.constant 0 : i32
    %c0_i32_0 = arith.constant 0 : i32
    return %arg0, %c0_i32 : i32, i32
  }
}

</mosaic_0001>

<bundles_post_ra>
// kernel: lightweight_cnn_head.1
= control target key start
LH: loop header
LB: loop body
LE: loop exit
PB: predicated region body
PF: predicated region fallthrough
CT: control target
= control target key end

     0   :  { %vm2079_vm0 = vcmask 523264   ;;  %s4907_s1 = inlined_call_operand.vmem [shape: bf16[256,512], index: 1, kind: input, shape index: {}]   ;;  %s4908_s0 = inlined_call_operand.vmem [shape: bf16[16,256], index: 0, kind: input, shape index: {}]   ;;  %s4909_s3 = inlined_call_operand.vmem [shape: bf16[512,512], index: 3, kind: input, shape index: {}]   ;;  %s4910_s2 = inlined_call_operand.vmem [shape: f32[1,512], index: 2, kind: input, shape index: {}]   ;;  %s4911_s5 = inlined_call_operand.vmem [shape: bf16[512,64], index: 5, kind: input, shape index: {}]   ;;  %s4912_s6 = inlined_call_operand.vmem [shape: f32[1,64], index: 6, kind: input, shape index: {}]   ;;  %s4913_s4 = inlined_call_operand.vmem [shape: f32[1,512], index: 4, kind: input, shape index: {}]   ;;  %s4914_s8 = inlined_call_operand.vmem [shape: f32[1,64], index: 8, kind: input, shape index: {}]   ;;  %s4915_s7 = inlined_call_operand.vmem [shape: bf16[64,64], index: 7, kind: input, shape index: {}]   ;;  %s4916_s9 = inlined_call_operand.vmem [shape: bf16[64,128], index: 9, kind: input, shape index: {}]   ;;  %s4917_s10 = inlined_call_operand.vmem [shape: f32[16,128], index: 10, kind: output, shape index: {}]  }
   0x1   :  { %v2326_v0 = vld [vmem:[%s4907_s1 + $0xe0] sm:$0xf]  ;;  %v3174_v1 = vld [vmem:[%s4907_s1 + $0xec] sm:$0xf0]  ;;  %v3172_v5 = vld [vmem:[%s4907_s1 + $0xe4] sm:$0xf] }
   0x2   :  { %v2454_v2 = vld [vmem:[%s4907_s1 + $0x1e0] sm:$0xf]  ;;  %v2327_v3 = vor.u32 %v3174_v1, %v2326_v0  ;;  %v3206_v4 = vld [vmem:[%s4907_s1 + $0x1ec] sm:$0xf0]  ;;  %v2328_v6 = vld [vmem:[%s4907_s1 + $0xf0] sm:$0xf0] }
   0x3   :  { %v2455_v7 = vor.u32 %v3206_v4, %v2454_v2  ;;  %v2331_v8 = vor.u32 %v3172_v5, %v2328_v6  ;;  %v3204_v9 = vld [vmem:[%s4907_s1 + $0x1e4] sm:$0xf]  ;;  %v2456_v10 = vld [vmem:[%s4907_s1 + $0x1f0] sm:$0xf0]  ;;  %v2310_v11 = vld [vmem:[%s4907_s1 + $0xc0] sm:$0xf] }
   0x4   :  { %442 = vmatpush.bf16.msra.mxu0 %v2327_v3  ;;  %v2459_v12 = vor.u32 %v3204_v9, %v2456_v10  ;;  %v3170_v13 = vld [vmem:[%s4907_s1 + $0xcc] sm:$0xf0]  ;;  %v2438_v14 = vld [vmem:[%s4907_s1 + $0x1c0] sm:$0xf]  ;;  %v3168_v18 = vld [vmem:[%s4907_s1 + $0xc4] sm:$0xf] }
   0x5   :  { %v3202_v15 = vld [vmem:[%s4907_s1 + $0x1cc] sm:$0xf0]  ;;  %456 = vmatpush.bf16.msra.mxu1 %v2455_v7  ;;  %470 = vmatpush.bf16.msra.mxu2 %v2331_v8  ;;  %v2311_v16 = vor.u32 %v3170_v13, %v2310_v11  ;;  %v2312_v19 = vld [vmem:[%s4907_s1 + $0xd0] sm:$0xf0]  ;;  %v3200_v20 = vld [vmem:[%s4907_s1 + $0x1c4] sm:$0xf] }
   0x6   :  { %v2439_v17 = vor.u32 %v3202_v15, %v2438_v14  ;;  %484 = vmatpush.bf16.msra.mxu3 %v2459_v12  ;;  %v2315_v21 = vor.u32 %v3168_v18, %v2312_v19  ;;  %v2440_v22 = vld [vmem:[%s4907_s1 + $0x1d0] sm:$0xf0]  ;;  %v2294_v23 = vld [vmem:[%s4907_s1 + $0xa0] sm:$0xf]  ;;  %v3166_v24 = vld [vmem:[%s4907_s1 + $0xac] sm:$0xf0] }
   0x7   :  { %v2443_v25 = vor.u32 %v3200_v20, %v2440_v22  ;;  %v2422_v26 = vld [vmem:[%s4907_s1 + $0x1a0] sm:$0xf]  ;;  %v3198_v27 = vld [vmem:[%s4907_s1 + $0x1ac] sm:$0xf0]  ;;  %v3164_v28 = vld [vmem:[%s4907_s1 + $0xa4] sm:$0xf]  ;;  %v2295_v29 = vor.u32 %v3166_v24, %v2294_v23 }
   0x8   :  { %443 = vmatpush.bf16.msra.mxu0 %v2311_v16  ;;  %v2296_v30 = vld [vmem:[%s4907_s1 + $0xb0] sm:$0xf0]  ;;  %v3196_v31 = vld [vmem:[%s4907_s1 + $0x1a4] sm:$0xf]  ;;  %v2423_v33 = vor.u32 %v3198_v27, %v2422_v26  ;;  %v2278_v35 = vld [vmem:[%s4907_s1 + $0x80] sm:$0xf] }
   0x9   :  { %v2424_v32 = vld [vmem:[%s4907_s1 + $0x1b0] sm:$0xf0]  ;;  %457 = vmatpush.bf16.msra.mxu1 %v2439_v17  ;;  %471 = vmatpush.bf16.msra.mxu2 %v2315_v21  ;;  %v2299_v34 = vor.u32 %v3164_v28, %v2296_v30  ;;  %v3162_v36 = vld [vmem:[%s4907_s1 + $0x8c] sm:$0xf0]  ;;  %v2406_v37 = vld [vmem:[%s4907_s1 + $0x180] sm:$0xf] }
   0xa   :  { %485 = vmatpush.bf16.msra.mxu3 %v2443_v25  ;;  %v2427_v38 = vor.u32 %v3196_v31, %v2424_v32  ;;  %v3194_v39 = vld [vmem:[%s4907_s1 + $0x18c] sm:$0xf0]  ;;  %v3160_v40 = vld [vmem:[%s4907_s1 + $0x84] sm:$0xf]  ;;  %v2280_v41 = vld [vmem:[%s4907_s1 + $0x90] sm:$0xf0]  ;;  %v2279_v44 = vor.u32 %v3162_v36, %v2278_v35 }
   0xb   :  { %v3192_v42 = vld [vmem:[%s4907_s1 + $0x184] sm:$0xf]  ;;  %v2408_v43 = vld [vmem:[%s4907_s1 + $0x190] sm:$0xf0]  ;;  %v2407_v45 = vor.u32 %v3194_v39, %v2406_v37  ;;  %v2283_v46 = vor.u32 %v3160_v40, %v2280_v41  ;;  %v2262_v47 = vld [vmem:[%s4907_s1 + $0x60] sm:$0xf] }
   0xc   :  { %444 = vmatpush.bf16.msra.mxu0 %v2295_v29  ;;  %v3158_v48 = vld [vmem:[%s4907_s1 + $0x6c] sm:$0xf0]  ;;  %v2390_v49 = vld [vmem:[%s4907_s1 + $0x160] sm:$0xf]  ;;  %v2411_v50 = vor.u32 %v3192_v42, %v2408_v43  ;;  %v3156_v52 = vld [vmem:[%s4907_s1 + $0x64] sm:$0xf] }
   0xd   :  { %458 = vmatpush.bf16.msra.mxu1 %v2423_v33  ;;  %472 = vmatpush.bf16.msra.mxu2 %v2299_v34  ;;  %v3190_v51 = vld [vmem:[%s4907_s1 + $0x16c] sm:$0xf0]  ;;  %v2264_v53 = vld [vmem:[%s4907_s1 + $0x70] sm:$0xf0]  ;;  %v3188_v54 = vld [vmem:[%s4907_s1 + $0x164] sm:$0xf]  ;;  %v2263_v56 = vor.u32 %v3158_v48, %v2262_v47 }
   0xe   :  { %486 = vmatpush.bf16.msra.mxu3 %v2427_v38  ;;  %v2392_v55 = vld [vmem:[%s4907_s1 + $0x170] sm:$0xf0]  ;;  %v2391_v57 = vor.u32 %v3190_v51, %v2390_v49  ;;  %v2267_v58 = vor.u32 %v3156_v52, %v2264_v53  ;;  %v2246_v59 = vld [vmem:[%s4907_s1 + $0x40] sm:$0xf]  ;;  %v3154_v60 = vld [vmem:[%s4907_s1 + $0x4c] sm:$0xf0] }
   0xf   :  { %v2374_v61 = vld [vmem:[%s4907_s1 + $0x140] sm:$0xf]  ;;  %v2395_v62 = vor.u32 %v3188_v54, %v2392_v55  ;;  %v3186_v63 = vld [vmem:[%s4907_s1 + $0x14c] sm:$0xf0]  ;;  %v3152_v0 = vld [vmem:[%s4907_s1 + $0x44] sm:$0xf]  ;;  %v2247_v4 = vor.u32 %v3154_v60, %v2246_v59 }
  0x10   :  { %445 = vmatpush.bf16.msra.mxu0 %v2279_v44  ;;  %v2248_v1 = vld [vmem:[%s4907_s1 + $0x50] sm:$0xf0]  ;;  %v3184_v2 = vld [vmem:[%s4907_s1 + $0x144] sm:$0xf]  ;;  %v2375_v5 = vor.u32 %v3186_v63, %v2374_v61  ;;  %v2230_v7 = vld [vmem:[%s4907_s1 + $0x20] sm:$0xf] }
  0x11   :  { %459 = vmatpush.bf16.msra.mxu1 %v2407_v45  ;;  %473 = vmatpush.bf16.msra.mxu2 %v2283_v46  ;;  %v2376_v3 = vld [vmem:[%s4907_s1 + $0x150] sm:$0xf0]  ;;  %v2251_v6 = vor.u32 %v3152_v0, %v2248_v1  ;;  %v3150_v8 = vld [vmem:[%s4907_s1 + $0x2c] sm:$0xf0]  ;;  %v2358_v9 = vld [vmem:[%s4907_s1 + $0x120] sm:$0xf] }
  0x12   :  { %487 = vmatpush.bf16.msra.mxu3 %v2411_v50  ;;  %v2379_v10 = vor.u32 %v3184_v2, %v2376_v3  ;;  %v3182_v11 = vld [vmem:[%s4907_s1 + $0x12c] sm:$0xf0]  ;;  %v3148_v12 = vld [vmem:[%s4907_s1 + $0x24] sm:$0xf]  ;;  %v2232_v13 = vld [vmem:[%s4907_s1 + $0x30] sm:$0xf0]  ;;  %v2231_v16 = vor.u32 %v3150_v8, %v2230_v7 }
  0x13   :  { %v3180_v14 = vld [vmem:[%s4907_s1 + $0x124] sm:$0xf]  ;;  %v2360_v15 = vld [vmem:[%s4907_s1 + $0x130] sm:$0xf0]  ;;  %v2214_v17 = vld [vmem:[%s4907_s1] sm:$0xf]  ;;  %v2359_v20 = vor.u32 %v3182_v11, %v2358_v9  ;;  %v2235_v21 = vor.u32 %v3148_v12, %v2232_v13 }
  0x14   :  { %446 = vmatpush.bf16.msra.mxu0 %v2263_v56  ;;  %v3146_v18 = vld [vmem:[%s4907_s1 + $0xc] sm:$0xf0]  ;;  %v2342_v19 = vld [vmem:[%s4907_s1 + $0x100] sm:$0xf]  ;;  %v3144_v23 = vld [vmem:[%s4907_s1 + $0x4] sm:$0xf]  ;;  %v2363_v25 = vor.u32 %v3180_v14, %v2360_v15 }
  0x15   :  { %460 = vmatpush.bf16.msra.mxu1 %v2391_v57  ;;  %474 = vmatpush.bf16.msra.mxu2 %v2267_v58  ;;  %v3178_v22 = vld [vmem:[%s4907_s1 + $0x10c] sm:$0xf0]  ;;  %v2216_v24 = vld [vmem:[%s4907_s1 + $0x10] sm:$0xf0]  ;;  %v3176_v26 = vld [vmem:[%s4907_s1 + $0x104] sm:$0xf]  ;;  %v2215_v32 = vor.u32 %v3146_v18, %v2214_v17 }
  0x16   :  { %488 = vmatpush.bf16.msra.mxu3 %v2395_v62  ;;  %v2344_v27 = vld [vmem:[%s4907_s1 + $0x110] sm:$0xf0]  ;;  %v2334_v28 = vld [vmem:[%s4907_s1 + $0xe8] sm:$0xf]  ;;  %v3175_v29 = vld [vmem:[%s4907_s1 + $0xf4] sm:$0xf0]  ;;  %v2343_v36 = vor.u32 %v3178_v22, %v2342_v19  ;;  %v2219_v37 = vor.u32 %v3144_v23, %v2216_v24 }
  0x17   :  { %v2462_v30 = vld [vmem:[%s4907_s1 + $0x1e8] sm:$0xf]  ;;  %v3207_v31 = vld [vmem:[%s4907_s1 + $0x1f4] sm:$0xf0]  ;;  %v3173_v33 = vld [vmem:[%s4907_s1 + $0xec] sm:$0xf]  ;;  %v2347_v41 = vor.u32 %v3176_v26, %v2344_v27  ;;  %v2335_v42 = vor.u32 %v3175_v29, %v2334_v28 }
  0x18   :  { %447 = vmatpush.bf16.msra.mxu0 %v2247_v4  ;;  %v2336_v34 = vld [vmem:[%s4907_s1 + $0xf8] sm:$0xf0]  ;;  %v3205_v35 = vld [vmem:[%s4907_s1 + $0x1ec] sm:$0xf]  ;;  %v2206_v39 = vld [vmem:[%s4908_s0] sm:$0xf]  ;;  %v2463_v45 = vor.u32 %v3207_v31, %v2462_v30 }
  0x19   :  { %461 = vmatpush.bf16.msra.mxu1 %v2375_v5  ;;  %475 = vmatpush.bf16.msra.mxu2 %v2251_v6  ;;  %v2464_v38 = vld [vmem:[%s4907_s1 + $0x1f8] sm:$0xf0]  ;;  %v3143_v40 = vld [vmem:[%s4908_s0 + $0x4] sm:$0xf0]  ;;  %v3142_v43 = vld [vmem:[%s4908_s0 + $0x4] sm:$0xf]  ;;  %v2339_v46 = vor.u32 %v3173_v33, %v2336_v34 }
  0x1a   :  { %489 = vmatpush.bf16.msra.mxu3 %v2379_v10  ;;  %v2208_v44 = vld [vmem:[%s4908_s0 + $0x8] sm:$0xf0]  ;;  %v2318_v47 = vld [vmem:[%s4907_s1 + $0xc8] sm:$0xf]  ;;  %v3171_v48 = vld [vmem:[%s4907_s1 + $0xd4] sm:$0xf0]  ;;  %v2467_v50 = vor.u32 %v3205_v35, %v2464_v38  ;;  %v3714_v51 = vor.u32 %v3143_v40, %v2206_v39 }
  0x1b   :  { %v2446_v49 = vld [vmem:[%s4907_s1 + $0x1c8] sm:$0xf]  ;;  %v3203_v52 = vld [vmem:[%s4907_s1 + $0x1d4] sm:$0xf0]  ;;  %v3169_v53 = vld [vmem:[%s4907_s1 + $0xcc] sm:$0xf]  ;;  %v3725_v55 = vor.u32 %v3142_v43, %v2208_v44  ;;  %v2319_v58 = vor.u32 %v3171_v48, %v2318_v47 }
  0x1c   :  { %448 = vmatpush.bf16.msra.mxu0 %v2231_v16  ;;  %v2320_v54 = vld [vmem:[%s4907_s1 + $0xd8] sm:$0xf0]  ;;  %v3201_v56 = vld [vmem:[%s4907_s1 + $0x1cc] sm:$0xf]  ;;  %v2447_v59 = vor.u32 %v3203_v52, %v2446_v49  ;;  %v2302_v61 = vld [vmem:[%s4907_s1 + $0xa8] sm:$0xf] }
  0x1d   :  { %462 = vmatpush.bf16.msra.mxu1 %v2359_v20  ;;  %476 = vmatpush.bf16.msra.mxu2 %v2235_v21  ;;  %v2448_v57 = vld [vmem:[%s4907_s1 + $0x1d8] sm:$0xf0]  ;;  %v2323_v60 = vor.u32 %v3169_v53, %v2320_v54  ;;  %v3167_v62 = vld [vmem:[%s4907_s1 + $0xb4] sm:$0xf0]  ;;  %v2430_v63 = vld [vmem:[%s4907_s1 + $0x1a8] sm:$0xf] }
  0x1e   :  { %490 = vmatpush.bf16.msra.mxu3 %v2363_v25  ;;  %v2451_v0 = vor.u32 %v3201_v56, %v2448_v57  ;;  %v3199_v1 = vld [vmem:[%s4907_s1 + $0x1b4] sm:$0xf0]  ;;  %v3165_v2 = vld [vmem:[%s4907_s1 + $0xac] sm:$0xf]  ;;  %v2304_v3 = vld [vmem:[%s4907_s1 + $0xb8] sm:$0xf0]  ;;  %v2303_v6 = vor.u32 %v3167_v62, %v2302_v61 }
  0x1f   :  { %v3197_v4 = vld [vmem:[%s4907_s1 + $0x1ac] sm:$0xf]  ;;  %v2432_v5 = vld [vmem:[%s4907_s1 + $0x1b8] sm:$0xf0]  ;;  %v2431_v7 = vor.u32 %v3199_v1, %v2430_v63  ;;  %v2307_v8 = vor.u32 %v3165_v2, %v2304_v3  ;;  %v2286_v9 = vld [vmem:[%s4907_s1 + $0x88] sm:$0xf] }
  0x20   :  { %449 = vmatpush.bf16.msra.mxu0 %v2215_v32  ;;  %v3163_v10 = vld [vmem:[%s4907_s1 + $0x94] sm:$0xf0]  ;;  %v2414_v11 = vld [vmem:[%s4907_s1 + $0x188] sm:$0xf]  ;;  %v2435_v12 = vor.u32 %v3197_v4, %v2432_v5  ;;  %v3161_v14 = vld [vmem:[%s4907_s1 + $0x8c] sm:$0xf] }
  0x21   :  { %463 = vmatpush.bf16.msra.mxu1 %v2343_v36  ;;  %477 = vmatpush.bf16.msra.mxu2 %v2219_v37  ;;  %v3195_v13 = vld [vmem:[%s4907_s1 + $0x194] sm:$0xf0]  ;;  %v2288_v15 = vld [vmem:[%s4907_s1 + $0x98] sm:$0xf0]  ;;  %v3193_v16 = vld [vmem:[%s4907_s1 + $0x18c] sm:$0xf]  ;;  %v2287_v18 = vor.u32 %v3163_v10, %v2286_v9 }
  0x22   :  { %491 = vmatpush.bf16.msra.mxu3 %v2347_v41  ;;  %v2416_v17 = vld [vmem:[%s4907_s1 + $0x198] sm:$0xf0]  ;;  %v2415_v19 = vor.u32 %v3195_v13, %v2414_v11  ;;  %v2291_v20 = vor.u32 %v3161_v14, %v2288_v15  ;;  %v2270_v21 = vld [vmem:[%s4907_s1 + $0x68] sm:$0xf]  ;;  %v3159_v22 = vld [vmem:[%s4907_s1 + $0x74] sm:$0xf0] }
  0x23   :  { %450 = vmatmul.bf16.vlgmr.msra.gmra.mxu0 %v3714_v51  ;;  %v2398_v23 = vld [vmem:[%s4907_s1 + $0x168] sm:$0xf]  ;;  %v2419_v24 = vor.u32 %v3193_v16, %v2416_v17  ;;  %v3191_v25 = vld [vmem:[%s4907_s1 + $0x174] sm:$0xf0]  ;;  %v3157_v26 = vld [vmem:[%s4907_s1 + $0x6c] sm:$0xf]  ;;  %v2271_v30 = vor.u32 %v3159_v22, %v2270_v21 }
  0x24   :  { %498 = vmatpush.bf16.msrb.mxu0 %v2335_v42  ;;  %478 = vmatmul.bf16.vlgmr.msra.gmra.mxu2 %v3714_v51  ;;  %v2272_v27 = vld [vmem:[%s4907_s1 + $0x78] sm:$0xf0]  ;;  %v3189_v28 = vld [vmem:[%s4907_s1 + $0x16c] sm:$0xf]  ;;  %v2399_v31 = vor.u32 %v3191_v25, %v2398_v23  ;;  %v2254_v33 = vld [vmem:[%s4907_s1 + $0x48] sm:$0xf] }
  0x25   :  { %512 = vmatpush.bf16.msrb.mxu1 %v2463_v45  ;;  %526 = vmatpush.bf16.msrb.mxu2 %v2339_v46  ;;  %v2400_v29 = vld [vmem:[%s4907_s1 + $0x178] sm:$0xf0]  ;;  %v2275_v32 = vor.u32 %v3157_v26, %v2272_v27  ;;  %v3155_v34 = vld [vmem:[%s4907_s1 + $0x54] sm:$0xf0]  ;;  %v2382_v35 = vld [vmem:[%s4907_s1 + $0x148] sm:$0xf] }
  0x26   :  { %540 = vmatpush.bf16.msrb.mxu3 %v2467_v50  ;;  %464 = vmatmul.bf16.vlgmr.msra.gmra.mxu1 %v3725_v55  ;;  %v2403_v36 = vor.u32 %v3189_v28, %v2400_v29  ;;  %v3187_v37 = vld [vmem:[%s4907_s1 + $0x154] sm:$0xf0]  ;;  %v3153_v38 = vld [vmem:[%s4907_s1 + $0x4c] sm:$0xf]  ;;  %v2256_v39 = vld [vmem:[%s4907_s1 + $0x58] sm:$0xf0]  ;;  %v2255_v42 = vor.u32 %v3155_v34, %v2254_v33 }
  0x27   :  { %492 = vmatmul.bf16.vlgmr.msra.gmra.mxu3 %v3725_v55  ;;  %v3185_v40 = vld [vmem:[%s4907_s1 + $0x14c] sm:$0xf]  ;;  %v2384_v41 = vld [vmem:[%s4907_s1 + $0x158] sm:$0xf0]  ;;  %v2383_v43 = vor.u32 %v3187_v37, %v2382_v35  ;;  %v2259_v44 = vor.u32 %v3153_v38, %v2256_v39  ;;  %v2238_v45 = vld [vmem:[%s4907_s1 + $0x28] sm:$0xf] }
  0x28   :  { %499 = vmatpush.bf16.msrb.mxu0 %v2319_v58  ;;  %v3151_v46 = vld [vmem:[%s4907_s1 + $0x34] sm:$0xf0]  ;;  %v2366_v47 = vld [vmem:[%s4907_s1 + $0x128] sm:$0xf]  ;;  %v2387_v48 = vor.u32 %v3185_v40, %v2384_v41  ;;  %v3149_v50 = vld [vmem:[%s4907_s1 + $0x2c] sm:$0xf] }
  0x29   :  { %513 = vmatpush.bf16.msrb.mxu1 %v2447_v59  ;;  %527 = vmatpush.bf16.msrb.mxu2 %v2323_v60  ;;  %v3183_v49 = vld [vmem:[%s4907_s1 + $0x134] sm:$0xf0]  ;;  %v2240_v52 = vld [vmem:[%s4907_s1 + $0x38] sm:$0xf0]  ;;  %v3181_v53 = vld [vmem:[%s4907_s1 + $0x12c] sm:$0xf]  ;;  %v2239_v56 = vor.u32 %v3151_v46, %v2238_v45 }
  0x2a   :  { %541 = vmatpush.bf16.msrb.mxu3 %v2451_v0  ;;  %v2368_v54 = vld [vmem:[%s4907_s1 + $0x138] sm:$0xf0]  ;;  %v2222_v57 = vld [vmem:[%s4907_s1 + $0x8] sm:$0xf]  ;;  %v2367_v58 = vor.u32 %v3183_v49, %v2366_v47  ;;  %v2243_v59 = vor.u32 %v3149_v50, %v2240_v52  ;;  %v3147_v60 = vld [vmem:[%s4907_s1 + $0x14] sm:$0xf0] }
  0x2b   :  { %v2350_v61 = vld [vmem:[%s4907_s1 + $0x108] sm:$0xf]  ;;  %v3179_v62 = vld [vmem:[%s4907_s1 + $0x114] sm:$0xf0]  ;;  %v2371_v63 = vor.u32 %v3181_v53, %v2368_v54  ;;  %v3145_v0 = vld [vmem:[%s4907_s1 + $0xc] sm:$0xf] }
  0x2c   :  { %500 = vmatpush.bf16.msrb.mxu0 %v2303_v6  ;;  %v2224_v1 = vld [vmem:[%s4907_s1 + $0x18] sm:$0xf0]  ;;  %v3177_v2 = vld [vmem:[%s4907_s1 + $0x10c] sm:$0xf]  ;;  %v2582_v4 = vld [vmem:[%s4909_s3 + $0xe0] sm:$0xf]  ;;  %v2223_v6 = vor.u32 %v3147_v60, %v2222_v57  ;;  %v2351_v9 = vor.u32 %v3179_v62, %v2350_v61 }
  0x2d   :  { %514 = vmatpush.bf16.msrb.mxu1 %v2431_v7  ;;  %528 = vmatpush.bf16.msrb.mxu2 %v2307_v8  ;;  %v2352_v3 = vld [vmem:[%s4907_s1 + $0x118] sm:$0xf0]  ;;  %v3238_v5 = vld [vmem:[%s4909_s3 + $0xec] sm:$0xf0]  ;;  %v2710_v7 = vld [vmem:[%s4909_s3 + $0x1e0] sm:$0xf]  ;;  %v2227_v10 = vor.u32 %v3145_v0, %v2224_v1 }
  0x2e   :  { %542 = vmatpush.bf16.msrb.mxu3 %v2435_v12  ;;  %v3270_v8 = vld [vmem:[%s4909_s3 + $0x1ec] sm:$0xf0]  ;;  %v2355_v11 = vor.u32 %v3177_v2, %v2352_v3  ;;  %v2583_v12 = vor.u32 %v3238_v5, %v2582_v4  ;;  %v2566_v13 = vld [vmem:[%s4909_s3 + $0xc0] sm:$0xf]  ;;  %v3236_v50 = vld [vmem:[%s4909_s3 + $0xe4] sm:$0xf] }
  0x2f   :  { %v3234_v14 = vld [vmem:[%s4909_s3 + $0xcc] sm:$0xf0]  ;;  %v2711_v15 = vor.u32 %v3270_v8, %v2710_v7  ;;  %v2694_v16 = vld [vmem:[%s4909_s3 + $0x1c0] sm:$0xf]  ;;  %v2584_v53 = vld [vmem:[%s4909_s3 + $0xf0] sm:$0xf0] }
  0x30   :  { %501 = vmatpush.bf16.msrb.mxu0 %v2287_v18  ;;  %v3266_v17 = vld [vmem:[%s4909_s3 + $0x1cc] sm:$0xf0]  ;;  %v2567_v18 = vor.u32 %v3234_v14, %v2566_v13  ;;  %v2678_v22 = vld [vmem:[%s4909_s3 + $0x1a0] sm:$0xf]  ;;  %v3232_v61 = vld [vmem:[%s4909_s3 + $0xc4] sm:$0xf] }
  0x31   :  { %515 = vmatpush.bf16.msrb.mxu1 %v2415_v19  ;;  %529 = vmatpush.bf16.msrb.mxu2 %v2291_v20  ;;  %v2550_v19 = vld [vmem:[%s4909_s3 + $0xa0] sm:$0xf]  ;;  %v3230_v20 = vld [vmem:[%s4909_s3 + $0xac] sm:$0xf0]  ;;  %v2695_v21 = vor.u32 %v3266_v17, %v2694_v16  ;;  %v2712_v8 = vld [vmem:[%s4909_s3 + $0x1f0] sm:$0xf0] }
  0x32   :  { %543 = vmatpush.bf16.msrb.mxu3 %v2419_v24  ;;  %v3262_v23 = vld [vmem:[%s4909_s3 + $0x1ac] sm:$0xf0]  ;;  %v2551_v24 = vor.u32 %v3230_v20, %v2550_v19  ;;  %v2534_v25 = vld [vmem:[%s4909_s3 + $0x80] sm:$0xf]  ;;  %v2552_v14 = vld [vmem:[%s4909_s3 + $0xb0] sm:$0xf0] }
  0x33   :  { %v2679_v26 = vor.u32 %v3262_v23, %v2678_v22  ;;  %v2662_v27 = vld [vmem:[%s4909_s3 + $0x180] sm:$0xf]  ;;  %v3218_v34 = vld [vmem:[%s4909_s3 + $0x4c] sm:$0xf0]  ;;  %v2696_v20 = vld [vmem:[%s4909_s3 + $0x1d0] sm:$0xf0] }
  0x34   :  { %502 = vmatpush.bf16.msrb.mxu0 %v2271_v30  ;;  %v2518_v29 = vld [vmem:[%s4909_s3 + $0x60] sm:$0xf]  ;;  %v3222_v30 = vld [vmem:[%s4909_s3 + $0x6c] sm:$0xf0] }
  0x35   :  { %516 = vmatpush.bf16.msrb.mxu1 %v2399_v31  ;;  %530 = vmatpush.bf16.msrb.mxu2 %v2275_v32  ;;  %v2519_v32 = vor.u32 %v3222_v30, %v2518_v29  ;;  %v2502_v33 = vld [vmem:[%s4909_s3 + $0x40] sm:$0xf]  ;;  %v3254_v37 = vld [vmem:[%s4909_s3 + $0x16c] sm:$0xf0]  ;;  %v2680_v30 = vld [vmem:[%s4909_s3 + $0x1b0] sm:$0xf0] }
  0x36   :  { %544 = vmatpush.bf16.msrb.mxu3 %v2403_v36  ;;  %v2503_v35 = vor.u32 %v3218_v34, %v2502_v33  ;;  %v2646_v36 = vld [vmem:[%s4909_s3 + $0x160] sm:$0xf]  ;;  %v3214_v40 = vld [vmem:[%s4909_s3 + $0x2c] sm:$0xf0]  ;;  %v3220_v34 = vld [vmem:[%s4909_s3 + $0x64] sm:$0xf] }
  0x37   :  { %v2647_v38 = vor.u32 %v3254_v37, %v2646_v36  ;;  %v2486_v39 = vld [vmem:[%s4909_s3 + $0x20] sm:$0xf]  ;;  %v3210_v46 = vld [vmem:[%s4909_s3 + $0xc] sm:$0xf0]  ;;  %v2520_v36 = vld [vmem:[%s4909_s3 + $0x70] sm:$0xf0] }
  0x38   :  { %503 = vmatpush.bf16.msrb.mxu0 %v2255_v42  ;;  %v2487_v41 = vor.u32 %v3214_v40, %v2486_v39  ;;  %v2630_v42 = vld [vmem:[%s4909_s3 + $0x140] sm:$0xf]  ;;  %v3302_v49 = vld [vmem:[%s4909_s3 + $0x2ec] sm:$0xf0]  ;;  %v2523_v37 = vor.u32 %v3220_v34, %v2520_v36  ;;  %v3256_v40 = vld [vmem:[%s4909_s3 + $0x184] sm:$0xf] }
  0x39   :  { %517 = vmatpush.bf16.msrb.mxu1 %v2383_v43  ;;  %531 = vmatpush.bf16.msrb.mxu2 %v2259_v44  ;;  %v3250_v43 = vld [vmem:[%s4909_s3 + $0x14c] sm:$0xf0]  ;;  %v2470_v45 = vld [vmem:[%s4909_s3] sm:$0xf] }
  0x3a   :  { %545 = vmatpush.bf16.msrb.mxu3 %v2387_v48  ;;  %v2631_v44 = vor.u32 %v3250_v43, %v2630_v42  ;;  %v2471_v47 = vor.u32 %v3210_v46, %v2470_v45  ;;  %v2838_v48 = vld [vmem:[%s4909_s3 + $0x2e0] sm:$0xf]  ;;  %v3246_v57 = vld [vmem:[%s4909_s3 + $0x12c] sm:$0xf0]  ;;  %v2664_v43 = vld [vmem:[%s4909_s3 + $0x190] sm:$0xf0] }
  0x3b   :  { %v2839_v52 = vor.u32 %v3302_v49, %v2838_v48  ;;  %v2614_v54 = vld [vmem:[%s4909_s3 + $0x120] sm:$0xf]  ;;  %v3298_v60 = vld [vmem:[%s4909_s3 + $0x2cc] sm:$0xf0]  ;;  %v2504_v49 = vld [vmem:[%s4909_s3 + $0x50] sm:$0xf0] }
  0x3c   :  { %504 = vmatpush.bf16.msrb.mxu0 %v2239_v56  ;;  %v2587_v56 = vor.u32 %v3236_v50, %v2584_v53  ;;  %v2598_v0 = vld [vmem:[%s4909_s3 + $0x100] sm:$0xf]  ;;  %v3242_v1 = vld [vmem:[%s4909_s3 + $0x10c] sm:$0xf0] }
  0x3d   :  { %518 = vmatpush.bf16.msrb.mxu1 %v2367_v58  ;;  %532 = vmatpush.bf16.msrb.mxu2 %v2243_v59  ;;  %v2615_v58 = vor.u32 %v3246_v57, %v2614_v54  ;;  %v2822_v59 = vld [vmem:[%s4909_s3 + $0x2c0] sm:$0xf]  ;;  %v2599_v3 = vor.u32 %v3242_v1, %v2598_v0  ;;  %v3334_v5 = vld [vmem:[%s4909_s3 + $0x3ec] sm:$0xf0]  ;;  %v3252_v57 = vld [vmem:[%s4909_s3 + $0x164] sm:$0xf] }
  0x3e   :  { %546 = vmatpush.bf16.msrb.mxu3 %v2371_v63  ;;  %v2823_v62 = vor.u32 %v3298_v60, %v2822_v59  ;;  %v2568_v63 = vld [vmem:[%s4909_s3 + $0xd0] sm:$0xf0]  ;;  %v2966_v4 = vld [vmem:[%s4909_s3 + $0x3e0] sm:$0xf]  ;;  %v3330_v17 = vld [vmem:[%s4909_s3 + $0x3cc] sm:$0xf0] }
  0x3f   :  { %v2571_v2 = vor.u32 %v3232_v61, %v2568_v63  ;;  %v2967_v7 = vor.u32 %v3334_v5, %v2966_v4  ;;  %v2950_v16 = vld [vmem:[%s4909_s3 + $0x3c0] sm:$0xf]  ;;  %v3290_v23 = vld [vmem:[%s4909_s3 + $0x28c] sm:$0xf0]  ;;  %v2488_v0 = vld [vmem:[%s4909_s3 + $0x30] sm:$0xf0] }
  0x40   :  { %505 = vmatpush.bf16.msrb.mxu0 %v2223_v6  ;;  %v3268_v6 = vld [vmem:[%s4909_s3 + $0x1e4] sm:$0xf]  ;;  %v2951_v19 = vor.u32 %v3330_v17, %v2950_v16  ;;  %v2790_v22 = vld [vmem:[%s4909_s3 + $0x280] sm:$0xf]  ;;  %v3286_v33 = vld [vmem:[%s4909_s3 + $0x26c] sm:$0xf0] }
  0x41   :  { %519 = vmatpush.bf16.msrb.mxu1 %v2351_v9  ;;  %533 = vmatpush.bf16.msrb.mxu2 %v2227_v10  ;;  %v2715_v9 = vor.u32 %v3268_v6, %v2712_v8  ;;  %v2806_v10 = vld [vmem:[%s4909_s3 + $0x2a0] sm:$0xf]  ;;  %v3322_v39 = vld [vmem:[%s4909_s3 + $0x38c] sm:$0xf0]  ;;  %v3248_v5 = vld [vmem:[%s4909_s3 + $0x144] sm:$0xf] }
  0x42   :  { %547 = vmatpush.bf16.msrb.mxu3 %v2355_v11  ;;  %v3294_v11 = vld [vmem:[%s4909_s3 + $0x2ac] sm:$0xf0]  ;;  %v2758_v45 = vld [vmem:[%s4909_s3 + $0x240] sm:$0xf]  ;;  %v2472_v16 = vld [vmem:[%s4909_s3 + $0x10] sm:$0xf0] }
  0x43   :  { %506 = vmatmul.bf16.vlgmr.msrb.gmra.mxu0 %v3714_v51  ;;  %v2807_v13 = vor.u32 %v3294_v11, %v2806_v10  ;;  %v3282_v46 = vld [vmem:[%s4909_s3 + $0x24c] sm:$0xf0]  ;;  %v2742_v60 = vld [vmem:[%s4909_s3 + $0x220] sm:$0xf]  ;;  %v3300_v17 = vld [vmem:[%s4909_s3 + $0x2e4] sm:$0xf] }
  0x44   :  { %1408 = vmatpush.bf16.msra.mxu0 %v2583_v12  ;;  %520 = vmatmul.bf16.vlgmr.msrb.gmra.mxu1 %v3725_v55  ;;  %v3228_v12 = vld [vmem:[%s4909_s3 + $0xa4] sm:$0xf]  ;;  %v2759_v48 = vor.u32 %v3282_v46, %v2758_v45  ;;  %v3318_v53 = vld [vmem:[%s4909_s3 + $0x36c] sm:$0xf0]  ;;  %v2726_v11 = vld [vmem:[%s4909_s3 + $0x200] sm:$0xf] }
  0x45   :  { %1422 = vmatpush.bf16.msra.mxu1 %v2711_v15  ;;  %534 = vmatmul.bf16.vlgmr.msrb.gmra.mxu2 %v3714_v51  ;;  %v3226_v51 = vld [vmem:[%s4909_s3 + $0x8c] sm:$0xf0]  ;;  %v2555_v15 = vor.u32 %v3228_v12, %v2552_v14 }
  0x46   :  { %548 = vmatmul.bf16.vlgmr.msrb.gmra.mxu3 %v3725_v55  ;;  %v3258_v55 = vld [vmem:[%s4909_s3 + $0x18c] sm:$0xf0]  ;;  %v2535_v28 = vor.u32 %v3226_v51, %v2534_v25  ;;  %1436 = vmatpush.bf16.msra.mxu2 %v2839_v52  ;;  %v2791_v25 = vor.u32 %v3290_v23, %v2790_v22  ;;  %v2536_v51 = vld [vmem:[%s4909_s3 + $0x90] sm:$0xf0]  ;;  %v2902_v52 = vld [vmem:[%s4909_s3 + $0x360] sm:$0xf] }
  0x47   :  { %v2663_v31 = vor.u32 %v3258_v55, %v2662_v27  ;;  %1450 = vmatpush.bf16.msra.mxu3 %v2967_v7  ;;  %v2934_v27 = vld [vmem:[%s4909_s3 + $0x3a0] sm:$0xf]  ;;  %v3326_v55 = vld [vmem:[%s4909_s3 + $0x3ac] sm:$0xf0] }
  0x48   :  { %1409 = vmatpush.bf16.msra.mxu0 %v2567_v18  ;;  %v3264_v18 = vld [vmem:[%s4909_s3 + $0x1c4] sm:$0xf]  ;;  %v2935_v29 = vor.u32 %v3326_v55, %v2934_v27  ;;  %v3278_v61 = vld [vmem:[%s4909_s3 + $0x22c] sm:$0xf0]  ;;  %v2870_v23 = vld [vmem:[%s4909_s3 + $0x320] sm:$0xf] }
  0x49   :  { %1423 = vmatpush.bf16.msra.mxu1 %v2695_v21  ;;  %v2699_v21 = vor.u32 %v3264_v18, %v2696_v20  ;;  %v2743_v63 = vor.u32 %v3278_v61, %v2742_v60  ;;  %v3314_v4 = vld [vmem:[%s4909_s3 + $0x34c] sm:$0xf0]  ;;  %v2840_v18 = vld [vmem:[%s4909_s3 + $0x2f0] sm:$0xf0] }
  0x4a   :  { %1437 = vmatpush.bf16.msra.mxu2 %v2823_v62  ;;  %v3212_v62 = vld [vmem:[%s4909_s3 + $0x24] sm:$0xf]  ;;  %v3274_v12 = vld [vmem:[%s4909_s3 + $0x20c] sm:$0xf0]  ;;  %v2952_v60 = vld [vmem:[%s4909_s3 + $0x3d0] sm:$0xf0] }
  0x4b   :  { %1451 = vmatpush.bf16.msra.mxu3 %v2951_v19  ;;  %v3306_v36 = vld [vmem:[%s4909_s3 + $0x30c] sm:$0xf0] }
  0x4c   :  { %1410 = vmatpush.bf16.msra.mxu0 %v2551_v24  ;;  %v3224_v24 = vld [vmem:[%s4909_s3 + $0x84] sm:$0xf] }
  0x4d   :  { %1424 = vmatpush.bf16.msra.mxu1 %v2679_v26  ;;  %v2539_v26 = vor.u32 %v3224_v24, %v2536_v51  ;;  %v3310_v24 = vld [vmem:[%s4909_s3 + $0x32c] sm:$0xf0]  ;;  %v2616_v51 = vld [vmem:[%s4909_s3 + $0x130] sm:$0xf0] }
  0x4e   :  { %1438 = vmatpush.bf16.msra.mxu2 %v2807_v13  ;;  %v3208_v13 = vld [vmem:[%s4909_s3 + $0x4] sm:$0xf]  ;;  %v2871_v55 = vor.u32 %v3310_v24, %v2870_v23  ;;  %v2920_v23 = vld [vmem:[%s4909_s3 + $0x390] sm:$0xf0] }
  0x4f   :  { %1452 = vmatpush.bf16.msra.mxu3 %v2935_v29  ;;  %v2475_v20 = vor.u32 %v3208_v13, %v2472_v16  ;;  %v3296_v29 = vld [vmem:[%s4909_s3 + $0x2c4] sm:$0xf]  ;;  %v2776_v16 = vld [vmem:[%s4909_s3 + $0x270] sm:$0xf0] }
  0x50   :  { %1411 = vmatpush.bf16.msra.mxu0 %v2535_v28  ;;  %v3260_v28 = vld [vmem:[%s4909_s3 + $0x1a4] sm:$0xf] }
  0x51   :  { %1425 = vmatpush.bf16.msra.mxu1 %v2663_v31  ;;  %v2683_v31 = vor.u32 %v3260_v28, %v2680_v30  ;;  %v2824_v30 = vld [vmem:[%s4909_s3 + $0x2d0] sm:$0xf0] }
  0x52   :  { %1439 = vmatpush.bf16.msra.mxu2 %v2791_v25  ;;  %v3244_v25 = vld [vmem:[%s4909_s3 + $0x124] sm:$0xf]  ;;  %v2827_v34 = vor.u32 %v3296_v29, %v2824_v30  ;;  %v2904_v29 = vld [vmem:[%s4909_s3 + $0x370] sm:$0xf0] }
  0x53   :  { %v2619_v28 = vor.u32 %v3244_v25, %v2616_v51  ;;  %v3280_v25 = vld [vmem:[%s4909_s3 + $0x244] sm:$0xf]  ;;  %v2760_v51 = vld [vmem:[%s4909_s3 + $0x250] sm:$0xf0] }
  0x54   :  { %1412 = vmatpush.bf16.msra.mxu0 %v2519_v32  ;;  %v2774_v32 = vld [vmem:[%s4909_s3 + $0x260] sm:$0xf] }
  0x55   :  { %1426 = vmatpush.bf16.msra.mxu1 %v2647_v38  ;;  %v2918_v38 = vld [vmem:[%s4909_s3 + $0x380] sm:$0xf] }
  0x56   :  { %v2919_v42 = vor.u32 %v3322_v39, %v2918_v38 }
  0x58   :  { %1413 = vmatpush.bf16.msra.mxu0 %v2503_v35  ;;  %v2775_v35 = vor.u32 %v3286_v33, %v2774_v32  ;;  %1453 = vmatpush.bf16.msra.mxu3 %v2919_v42  ;;  %v2600_v42 = vld [vmem:[%s4909_s3 + $0x110] sm:$0xf0] }
  0x59   :  { %1427 = vmatpush.bf16.msra.mxu1 %v2631_v44  ;;  %v2667_v44 = vor.u32 %v3256_v40, %v2664_v43  ;;  %v3240_v40 = vld [vmem:[%s4909_s3 + $0x104] sm:$0xf] }
  0x5a   :  { %1440 = vmatpush.bf16.msra.mxu2 %v2775_v35  ;;  %v2854_v35 = vld [vmem:[%s4909_s3 + $0x300] sm:$0xf]  ;;  %v3332_v43 = vld [vmem:[%s4909_s3 + $0x3e4] sm:$0xf]  ;;  %v2603_v46 = vor.u32 %v3240_v40, %v2600_v42 }
  0x5b   :  { %v2855_v45 = vor.u32 %v3306_v36, %v2854_v35 }
  0x5c   :  { %1414 = vmatpush.bf16.msra.mxu0 %v2487_v41  ;;  %v4089_v41 = vld [vmem:[%s4910_s2] sm:$0xf] }
  0x5d   :  { %1428 = vmatpush.bf16.msra.mxu1 %v2615_v58  ;;  %v104_v54 = vperm.slane %v4089_v41, 0  ;;  %v2648_v58 = vld [vmem:[%s4909_s3 + $0x170] sm:$0xf0]  ;;  %v105_v19 = vperm.slane %v4089_v41, 1 }
  0x5e   :  { %1441 = vmatpush.bf16.msra.mxu2 %v2759_v48  ;;  %v2651_v59 = vor.u32 %v3252_v57, %v2648_v58 }
  0x60   :  { %1415 = vmatpush.bf16.msra.mxu0 %v2471_v47  ;;  %v3216_v47 = vld [vmem:[%s4909_s3 + $0x44] sm:$0xf] }
  0x61   :  { %1429 = vmatpush.bf16.msra.mxu1 %v2599_v3  ;;  %v2507_v50 = vor.u32 %v3216_v47, %v2504_v49  ;;  %v2886_v3 = vld [vmem:[%s4909_s3 + $0x340] sm:$0xf]  ;;  %v2968_v47 = vld [vmem:[%s4909_s3 + $0x3f0] sm:$0xf0] }
  0x62   :  { %1442 = vmatpush.bf16.msra.mxu2 %v2743_v63  ;;  %v2887_v8 = vor.u32 %v3314_v4, %v2886_v3 }
  0x64   :  { %1464 = vmatpush.bf16.msrb.mxu0 %v2587_v56  ;;  %v2903_v56 = vor.u32 %v3318_v53, %v2902_v52  ;;  %v3292_v52 = vld [vmem:[%s4909_s3 + $0x2a4] sm:$0xf]  ;;  %v2808_v53 = vld [vmem:[%s4909_s3 + $0x2b0] sm:$0xf0] }
  0x65   :  { %1478 = vmatpush.bf16.msrb.mxu1 %v2715_v9  ;;  %v2632_v9 = vld [vmem:[%s4909_s3 + $0x150] sm:$0xf0] }
  0x66   :  { %1454 = vmatpush.bf16.msra.mxu3 %v2903_v56  ;;  %v2635_v10 = vor.u32 %v3248_v5, %v2632_v9  ;;  %v2811_v56 = vor.u32 %v3292_v52, %v2808_v53  ;;  %v2936_v9 = vld [vmem:[%s4909_s3 + $0x3b0] sm:$0xf0]  ;;  %v107_v52 = vperm.slane %v4089_v41, 3  ;;  %v3272_v53 = vld [vmem:[%s4909_s3 + $0x204] sm:$0xf] }
  0x68   :  { %1465 = vmatpush.bf16.msrb.mxu0 %v2571_v2  ;;  %v2491_v2 = vor.u32 %v3212_v62, %v2488_v0 }
  0x69   :  { %1479 = vmatpush.bf16.msrb.mxu1 %v2699_v21  ;;  %v2843_v21 = vor.u32 %v3300_v17, %v2840_v18 }
  0x6a   :  { %1455 = vmatpush.bf16.msra.mxu3 %v2887_v8  ;;  %v3324_v8 = vld [vmem:[%s4909_s3 + $0x3a4] sm:$0xf] }
  0x6c   :  { %1466 = vmatpush.bf16.msrb.mxu0 %v2555_v15  ;;  %v2727_v15 = vor.u32 %v3274_v12, %v2726_v11  ;;  %v2939_v12 = vor.u32 %v3324_v8, %v2936_v9 }
  0x6d   :  { %1480 = vmatpush.bf16.msrb.mxu1 %v2683_v31 }
  0x6e   :  { %1443 = vmatpush.bf16.msra.mxu2 %v2727_v15  ;;  %1456 = vmatpush.bf16.msra.mxu3 %v2871_v55  ;;  %v3284_v15 = vld [vmem:[%s4909_s3 + $0x264] sm:$0xf] }
  0x6f   :  { %v2779_v18 = vor.u32 %v3284_v15, %v2776_v16 }
  0x70   :  { %1467 = vmatpush.bf16.msrb.mxu0 %v2539_v26 }
  0x71   :  { %1481 = vmatpush.bf16.msrb.mxu1 %v2667_v44 }
  0x72   :  { %1492 = vmatpush.bf16.msrb.mxu2 %v2843_v21  ;;  %1457 = vmatpush.bf16.msra.mxu3 %v2855_v45  ;;  %v2888_v45 = vld [vmem:[%s4909_s3 + $0x350] sm:$0xf0] }
  0x74   :  { %1468 = vmatpush.bf16.msrb.mxu0 %v2523_v37 }
  0x75   :  { %1482 = vmatpush.bf16.msrb.mxu1 %v2651_v59  ;;  %v3328_v59 = vld [vmem:[%s4909_s3 + $0x3c4] sm:$0xf] }
  0x76   :  { %1493 = vmatpush.bf16.msrb.mxu2 %v2827_v34  ;;  %v2955_v0 = vor.u32 %v3328_v59, %v2952_v60  ;;  %v2744_v34 = vld [vmem:[%s4909_s3 + $0x230] sm:$0xf0] }
  0x78   :  { %1469 = vmatpush.bf16.msrb.mxu0 %v2507_v50  ;;  %v2971_v50 = vor.u32 %v3332_v43, %v2968_v47  ;;  %v3312_v43 = vld [vmem:[%s4909_s3 + $0x344] sm:$0xf] }
  0x79   :  { %1483 = vmatpush.bf16.msrb.mxu1 %v2635_v10 }
  0x7a   :  { %1506 = vmatpush.bf16.msrb.mxu3 %v2971_v50  ;;  %1494 = vmatpush.bf16.msrb.mxu2 %v2811_v56  ;;  %v3239_v50 = vld [vmem:[%s4909_s3 + $0xf4] sm:$0xf0] }
  0x7c   :  { %1470 = vmatpush.bf16.msrb.mxu0 %v2491_v2  ;;  %v2792_v2 = vld [vmem:[%s4909_s3 + $0x290] sm:$0xf0] }
  0x7d   :  { %1484 = vmatpush.bf16.msrb.mxu1 %v2619_v28  ;;  %v3316_v28 = vld [vmem:[%s4909_s3 + $0x364] sm:$0xf] }
  0x7e   :  { %1507 = vmatpush.bf16.msrb.mxu3 %v2955_v0  ;;  %v3308_v0 = vld [vmem:[%s4909_s3 + $0x324] sm:$0xf] }
  0x80   :  { %1471 = vmatpush.bf16.msrb.mxu0 %v2475_v20  ;;  %v3320_v20 = vld [vmem:[%s4909_s3 + $0x384] sm:$0xf] }
  0x81   :  { %1485 = vmatpush.bf16.msrb.mxu1 %v2603_v46  ;;  %v2923_v24 = vor.u32 %v3320_v20, %v2920_v23  ;;  %v3304_v20 = vld [vmem:[%s4909_s3 + $0x304] sm:$0xf]  ;;  %v2558_v23 = vld [vmem:[%s4909_s3 + $0xa8] sm:$0xf] }
  0x82   :  { %1508 = vmatpush.bf16.msrb.mxu3 %v2939_v12  ;;  %v3271_v12 = vld [vmem:[%s4909_s3 + $0x1f4] sm:$0xf0] }
  0x86   :  { %1509 = vmatpush.bf16.msrb.mxu3 %v2923_v24  ;;  %v3231_v24 = vld [vmem:[%s4909_s3 + $0xb4] sm:$0xf0] }
  0xa0   :  { %v451_v1 = vpop.f32.mrf.mxu0 }
  0xa1   :  { %v452_v6 = vadd.f32 %v451_v1, %v104_v54  ;;  %v3288_v1 = vld [vmem:[%s4909_s3 + $0x284] sm:$0xf] }
  0xa3   :  { %v465_v7 = vpop.f32.mrf.mxu1 }
  0xa4   :  { %v4152_v14 = vadd.f32 %v465_v7, %v452_v6  ;;  %v2795_v6 = vor.u32 %v3288_v1, %v2792_v2 }
  0xa6   :  { %v562_v22 = vmul.f32 0.044715, %v4152_v14  ;;  %1495 = vmatpush.bf16.msrb.mxu2 %v2795_v6  ;;  %v554_v36 = vmul.f32 0.5, %v4152_v14 }
  0xa7   :  { %v479_v27 = vpop.f32.mrf.mxu2 }
  0xa8   :  { %v570_v26 = vmul.f32 %v562_v22, %v4152_v14  ;;  %v480_v31 = vadd.f32 %v479_v27, %v105_v19  ;;  %v453_v32 = vpop.f32.mrf.mxu0  ;;  %v2763_v27 = vor.u32 %v3280_v25, %v2760_v51 }
  0xa9   :  { %v454_v38 = vadd.f32 %v453_v32, %v104_v54  ;;  %v2907_v32 = vor.u32 %v3316_v28, %v2904_v29 }
  0xaa   :  { %v493_v33 = vpop.f32.mrf.mxu3  ;;  %v578_v37 = vmul.f32 %v570_v26, %v4152_v14  ;;  %1496 = vmatpush.bf16.msrb.mxu2 %v2779_v18 }
  0xab   :  { %v467_v39 = vpop.f32.mrf.mxu1  ;;  %v4200_v44 = vadd.f32 %v493_v33, %v480_v31  ;;  %v106_v31 = vperm.slane %v4089_v41, 2  ;;  %v3276_v33 = vld [vmem:[%s4909_s3 + $0x224] sm:$0xf]  ;;  %1510 = vmatpush.bf16.msrb.mxu3 %v2907_v32  ;;  %v2559_v32 = vor.u32 %v3231_v24, %v2558_v23  ;;  %v3223_v41 = vld [vmem:[%s4909_s3 + $0x74] sm:$0xf0] }
  0xac   :  { %v586_v48 = vadd.f32 %v578_v37, %v4152_v14  ;;  %v4206_v49 = vadd.f32 %v467_v39, %v454_v38  ;;  %v2747_v38 = vor.u32 %v3276_v33, %v2744_v34  ;;  %v2590_v14 = vld [vmem:[%s4909_s3 + $0xe8] sm:$0xf]  ;;  %v3267_v34 = vld [vmem:[%s4909_s3 + $0x1d4] sm:$0xf0] }
  0xad   :  { %v563_v54 = vmul.f32 0.044715, %v4200_v44  ;;  %v2702_v33 = vld [vmem:[%s4909_s3 + $0x1c8] sm:$0xf] }
  0xae   :  { %v566_v57 = vmul.f32 0.044715, %v4206_v49  ;;  %v594_v61 = vmul.f32 0.7978846, %v586_v48  ;;  %1497 = vmatpush.bf16.msrb.mxu2 %v2763_v27  ;;  %v558_v42 = vmul.f32 0.5, %v4206_v49 }
  0xaf   :  { %v571_v58 = vmul.f32 %v563_v54, %v4200_v44  ;;  %v481_v63 = vpop.f32.mrf.mxu2  ;;  %v2728_v54 = vld [vmem:[%s4909_s3 + $0x210] sm:$0xf0] }
  0xb0   :  { %v574_v62 = vmul.f32 %v566_v57, %v4206_v49  ;;  %v482_v4 = vadd.f32 %v481_v63, %v105_v19  ;;  %3379 = vtanh.f32 %v594_v61  ;;  %v2731_v60 = vor.u32 %v3272_v53, %v2728_v54  ;;  %v3235_v63 = vld [vmem:[%s4909_s3 + $0xd4] sm:$0xf0]  ;;  %v2526_v53 = vld [vmem:[%s4909_s3 + $0x68] sm:$0xf] }
  0xb1   :  { %v579_v3 = vmul.f32 %v571_v58, %v4200_v44  ;;  %v2591_v61 = vor.u32 %v3239_v50, %v2590_v14  ;;  %v3263_v14 = vld [vmem:[%s4909_s3 + $0x1b4] sm:$0xf0] }
  0xb2   :  { %v495_v5 = vpop.f32.mrf.mxu3  ;;  %v582_v7 = vmul.f32 %v574_v62, %v4206_v49  ;;  %1498 = vmatpush.bf16.msrb.mxu2 %v2747_v38  ;;  %v2574_v62 = vld [vmem:[%s4909_s3 + $0xc8] sm:$0xf] }
  0xb3   :  { %v587_v10 = vadd.f32 %v579_v3, %v4200_v44  ;;  %v4239_v11 = vadd.f32 %v495_v5, %v482_v4  ;;  %v2872_v3 = vld [vmem:[%s4909_s3 + $0x330] sm:$0xf0]  ;;  %v2575_v9 = vor.u32 %v3235_v63, %v2574_v62  ;;  %v3259_v62 = vld [vmem:[%s4909_s3 + $0x194] sm:$0xf0] }
  0xb4   :  { %v590_v13 = vadd.f32 %v582_v7, %v4206_v49  ;;  %v2891_v49 = vor.u32 %v3312_v43, %v2888_v45  ;;  %v2875_v5 = vor.u32 %v3308_v0, %v2872_v3  ;;  %v2703_v43 = vor.u32 %v3267_v34, %v2702_v33  ;;  %v2510_v0 = vld [vmem:[%s4909_s3 + $0x48] sm:$0xf] }
  0xb5   :  { %v567_v17 = vmul.f32 0.044715, %v4239_v11  ;;  %v595_v21 = vmul.f32 0.7978846, %v587_v10  ;;  %v2718_v10 = vld [vmem:[%s4909_s3 + $0x1e8] sm:$0xf] }
  0xb6   :  { %v598_v19 = vmul.f32 0.7978846, %v590_v13  ;;  %v3380_v55 = vpop.eup %3379  ;;  %1511 = vmatpush.bf16.msrb.mxu3 %v2891_v49  ;;  %1499 = vmatpush.bf16.msrb.mxu2 %v2731_v60  ;;  %v559_v18 = vmul.f32 0.5, %v4239_v11  ;;  %v2719_v29 = vor.u32 %v3271_v12, %v2718_v10  ;;  %v2527_v60 = vor.u32 %v3223_v41, %v2526_v53  ;;  %v2494_v12 = vld [vmem:[%s4909_s3 + $0x28] sm:$0xf] }
  0xb7   :  { %v575_v22 = vmul.f32 %v567_v17, %v4239_v11  ;;  %v610_v37 = vadd.f32 1.0, %v3380_v55  ;;  %v555_v17 = vmul.f32 0.5, %v4200_v44  ;;  %v2856_v44 = vld [vmem:[%s4909_s3 + $0x310] sm:$0xf0]  ;;  %v3335_v53 = vld [vmem:[%s4909_s3 + $0x3f4] sm:$0xf0] }
  0xb8   :  { %3381 = vtanh.f32 %v598_v19  ;;  %v2859_v27 = vor.u32 %v3304_v20, %v2856_v44  ;;  %v2846_v44 = vld [vmem:[%s4909_s3 + $0x2e8] sm:$0xf]  ;;  %v3269_v41 = vld [vmem:[%s4909_s3 + $0x1ec] sm:$0xf] }
  0xb9   :  { %v583_v26 = vmul.f32 %v575_v22, %v4239_v11  ;;  %3383 = vtanh.f32 %v595_v21  ;;  %v618_v58 = vmul.f32 %v610_v37, %v554_v36  ;;  %v2542_v36 = vld [vmem:[%s4909_s3 + $0x88] sm:$0xf]  ;;  %v3227_v37 = vld [vmem:[%s4909_s3 + $0x94] sm:$0xf0] }
  0xba   :  { %1512 = vmatpush.bf16.msrb.mxu3 %v2875_v5 }
  0xbb   :  { %v591_v30 = vadd.f32 %v583_v26, %v4239_v11 }
  0xbd   :  { %v599_v35 = vmul.f32 0.7978846, %v591_v30 }
  0xbe   :  { %v3382_v39 = vpop.eup %3381  ;;  %1513 = vmatpush.bf16.msrb.mxu3 %v2859_v27 }
  0xbf   :  { %v614_v48 = vadd.f32 1.0, %v3382_v39  ;;  %3385 = vtanh.f32 %v599_v35  ;;  %v3384_v56 = vpop.eup %3383 }
  0xc0   :  { %v507_v40 = vpop.f32.mrf.mxu0  ;;  %v611_v4 = vadd.f32 1.0, %v3384_v56 }
  0xc1   :  { %v508_v46 = vadd.f32 %v507_v40, %v106_v31  ;;  %v521_v47 = vpop.f32.mrf.mxu1  ;;  %v622_v59 = vmul.f32 %v614_v48, %v558_v42  ;;  %v2686_v48 = vld [vmem:[%s4909_s3 + $0x1a8] sm:$0xf] }
  0xc2   :  { %v619_v51 = vmul.f32 %v611_v4, %v555_v17  ;;  %v2638_v17 = vld [vmem:[%s4909_s3 + $0x148] sm:$0xf] }
  0xc3   :  { %v4298_v57 = vadd.f32 %v521_v47, %v508_v46  ;;  %v4310_v2 = vpack.c.bf16 %v622_v59, %v618_v58  ;;  %v2543_v47 = vor.u32 %v3227_v37, %v2542_v36  ;;  %v2687_v58 = vor.u32 %v3263_v14, %v2686_v48  ;;  %v2622_v36 = vld [vmem:[%s4909_s3 + $0x128] sm:$0xf] }
  0xc4   :  { %v2974_v14 = vld [vmem:[%s4909_s3 + $0x3e8] sm:$0xf] }
  0xc5   :  { %v564_v1 = vmul.f32 0.044715, %v4298_v57  ;;  %v3386_v6 = vpop.eup %3385  ;;  %1416 = vmatmul.bf16.vlgmr.msra.gmra.mxu0 %v4310_v2 }
  0xc6   :  { %1520 = vmatpush.bf16.msra.mxu0 %v2591_v61  ;;  %v615_v19 = vadd.f32 1.0, %v3386_v6  ;;  %v2670_v61 = vld [vmem:[%s4909_s3 + $0x188] sm:$0xf] }
  0xc7   :  { %v572_v7 = vmul.f32 %v564_v1, %v4298_v57  ;;  %v3219_v1 = vld [vmem:[%s4909_s3 + $0x54] sm:$0xf0]  ;;  %v2671_v5 = vor.u32 %v3259_v62, %v2670_v61  ;;  %v2814_v61 = vld [vmem:[%s4909_s3 + $0x2a8] sm:$0xf] }
  0xc8   :  { %v535_v8 = vpop.f32.mrf.mxu2  ;;  %v509_v16 = vpop.f32.mrf.mxu0  ;;  %v623_v26 = vmul.f32 %v615_v19, %v559_v18  ;;  %v3251_v18 = vld [vmem:[%s4909_s3 + $0x154] sm:$0xf0]  ;;  %v2478_v19 = vld [vmem:[%s4909_s3 + $0x8] sm:$0xf] }
  0xc9   :  { %v536_v13 = vadd.f32 %v535_v8, %v107_v52  ;;  %v549_v15 = vpop.f32.mrf.mxu3  ;;  %v580_v21 = vmul.f32 %v572_v7, %v4298_v57  ;;  %v510_v22 = vadd.f32 %v509_v16, %v106_v31  ;;  %v523_v25 = vpop.f32.mrf.mxu1  ;;  %v2511_v7 = vor.u32 %v3219_v1, %v2510_v0  ;;  %v2654_v8 = vld [vmem:[%s4909_s3 + $0x168] sm:$0xf]  ;;  %v3295_v62 = vld [vmem:[%s4909_s3 + $0x2b4] sm:$0xf0]  ;;  %v2560_v0 = vld [vmem:[%s4909_s3 + $0xb8] sm:$0xf0] }
  0xca   :  { %1521 = vmatpush.bf16.msra.mxu0 %v2575_v9  ;;  %v4346_v31 = vpack.c.bf16 %v623_v26, %v619_v51  ;;  %v3255_v9 = vld [vmem:[%s4909_s3 + $0x174] sm:$0xf0]  ;;  %v3237_v51 = vld [vmem:[%s4909_s3 + $0xec] sm:$0xf]  ;;  %v556_v26 = vmul.f32 0.5, %v4298_v57 }
  0xcb   :  { %v4340_v11 = vadd.f32 %v549_v15, %v536_v13  ;;  %v588_v55 = vadd.f32 %v580_v21, %v4298_v57  ;;  %v4343_v28 = vadd.f32 %v523_v25, %v510_v22  ;;  %v3215_v13 = vld [vmem:[%s4909_s3 + $0x34] sm:$0xf0]  ;;  %v2655_v16 = vor.u32 %v3255_v9, %v2654_v8 }
  0xcc   :  { %1430 = vmatmul.bf16.vlgmr.msra.gmra.mxu1 %v4346_v31  ;;  %v2495_v21 = vor.u32 %v3215_v13, %v2494_v12  ;;  %v3211_v22 = vld [vmem:[%s4909_s3 + $0x14] sm:$0xf0]  ;;  %v2815_v8 = vor.u32 %v3295_v62, %v2814_v61  ;;  %v2704_v12 = vld [vmem:[%s4909_s3 + $0x1d8] sm:$0xf0]  ;;  %v2798_v13 = vld [vmem:[%s4909_s3 + $0x288] sm:$0xf] }
  0xcd   :  { %v565_v30 = vmul.f32 0.044715, %v4340_v11  ;;  %v568_v35 = vmul.f32 0.044715, %v4343_v28  ;;  %v596_v39 = vmul.f32 0.7978846, %v588_v55  ;;  %1534 = vmatpush.bf16.msra.mxu1 %v2719_v29  ;;  %v2479_v33 = vor.u32 %v3211_v22, %v2478_v19 }
  0xce   :  { %1522 = vmatpush.bf16.msra.mxu0 %v2559_v32  ;;  %v3303_v25 = vld [vmem:[%s4909_s3 + $0x2f4] sm:$0xf0]  ;;  %v560_v27 = vmul.f32 0.5, %v4343_v28  ;;  %v2592_v29 = vld [vmem:[%s4909_s3 + $0xf8] sm:$0xf0] }
  0xcf   :  { %v573_v38 = vmul.f32 %v565_v30, %v4340_v11  ;;  %v576_v40 = vmul.f32 %v568_v35, %v4343_v28  ;;  %3387 = vtanh.f32 %v596_v39  ;;  %v2639_v30 = vor.u32 %v3251_v18, %v2638_v17  ;;  %v3247_v57 = vld [vmem:[%s4909_s3 + $0x134] sm:$0xf0]  ;;  %v2544_v17 = vld [vmem:[%s4909_s3 + $0x98] sm:$0xf0]  ;;  %v3249_v61 = vld [vmem:[%s4909_s3 + $0x14c] sm:$0xf] }
  0xd0   :  { %v537_v42 = vpop.f32.mrf.mxu2  ;;  %v2595_v37 = vor.u32 %v3237_v51, %v2592_v29  ;;  %v3299_v39 = vld [vmem:[%s4909_s3 + $0x2d4] sm:$0xf0]  ;;  %v2528_v51 = vld [vmem:[%s4909_s3 + $0x78] sm:$0xf0] }
  0xd1   :  { %v581_v45 = vmul.f32 %v573_v38, %v4340_v11  ;;  %v538_v46 = vadd.f32 %v537_v42, %v107_v52  ;;  %v584_v50 = vmul.f32 %v576_v40, %v4343_v28  ;;  %v551_v49 = vpop.f32.mrf.mxu3  ;;  %1535 = vmatpush.bf16.msra.mxu1 %v2703_v43  ;;  %v2830_v38 = vld [vmem:[%s4909_s3 + $0x2c8] sm:$0xf]  ;;  %v3233_v42 = vld [vmem:[%s4909_s3 + $0xcc] sm:$0xf]  ;;  %v2576_v43 = vld [vmem:[%s4909_s3 + $0xd8] sm:$0xf0] }
  0xd2   :  { %1523 = vmatpush.bf16.msra.mxu0 %v2543_v47  ;;  %v3243_v47 = vld [vmem:[%s4909_s3 + $0x114] sm:$0xf0]  ;;  %v2640_v62 = vld [vmem:[%s4909_s3 + $0x158] sm:$0xf0] }
  0xd3   :  { %v589_v52 = vadd.f32 %v581_v45, %v4340_v11  ;;  %v4381_v54 = vadd.f32 %v551_v49, %v538_v46  ;;  %v592_v56 = vadd.f32 %v584_v50, %v4343_v28  ;;  %v2847_v28 = vor.u32 %v3303_v25, %v2846_v44  ;;  %v2606_v45 = vld [vmem:[%s4909_s3 + $0x108] sm:$0xf]  ;;  %v2688_v44 = vld [vmem:[%s4909_s3 + $0x1b8] sm:$0xf0]  ;;  %v3221_v25 = vld [vmem:[%s4909_s3 + $0x6c] sm:$0xf] }
  0xd4   :  { %v2623_v46 = vor.u32 %v3247_v57, %v2622_v36  ;;  %v2831_v49 = vor.u32 %v3299_v39, %v2830_v38  ;;  %v3217_v57 = vld [vmem:[%s4909_s3 + $0x4c] sm:$0xf]  ;;  %v3283_v38 = vld [vmem:[%s4909_s3 + $0x254] sm:$0xf0] }
  0xd5   :  { %v569_v59 = vmul.f32 0.044715, %v4381_v54  ;;  %v600_v63 = vmul.f32 0.7978846, %v592_v56  ;;  %v597_v3 = vmul.f32 0.7978846, %v589_v52  ;;  %1536 = vmatpush.bf16.msra.mxu1 %v2687_v58  ;;  %1472 = vmatmul.bf16.vlgmr.msrb.gmra.mxu0 %v4310_v2  ;;  %v3388_v10 = vpop.eup %3387  ;;  %v2579_v56 = vor.u32 %v3233_v42, %v2576_v43 }
  0xd6   :  { %1524 = vmatpush.bf16.msra.mxu0 %v2527_v60  ;;  %v612_v23 = vadd.f32 1.0, %v3388_v10  ;;  %v2720_v52 = vld [vmem:[%s4909_s3 + $0x1f8] sm:$0xf0]  ;;  %v557_v58 = vmul.f32 0.5, %v4340_v11  ;;  %v2607_v11 = vor.u32 %v3243_v47, %v2606_v45  ;;  %v3265_v10 = vld [vmem:[%s4909_s3 + $0x1cc] sm:$0xf] }
  0xd7   :  { %v577_v4 = vmul.f32 %v569_v59, %v4381_v54  ;;  %3389 = vtanh.f32 %v600_v63  ;;  %v561_v59 = vmul.f32 0.5, %v4381_v54  ;;  %v3229_v63 = vld [vmem:[%s4909_s3 + $0xac] sm:$0xf]  ;;  %v2707_v19 = vor.u32 %v3265_v10, %v2704_v12  ;;  %v2910_v43 = vld [vmem:[%s4909_s3 + $0x368] sm:$0xf] }
  0xd8   :  { %3391 = vtanh.f32 %v597_v3  ;;  %v620_v34 = vmul.f32 %v612_v23, %v556_v26  ;;  %v2975_v3 = vor.u32 %v3335_v53, %v2974_v14  ;;  %v2563_v9 = vor.u32 %v3229_v63, %v2560_v0  ;;  %v3327_v23 = vld [vmem:[%s4909_s3 + $0x3b4] sm:$0xf0]  ;;  %v2782_v26 = vld [vmem:[%s4909_s3 + $0x268] sm:$0xf]  ;;  %v3253_v47 = vld [vmem:[%s4909_s3 + $0x16c] sm:$0xf] }
  0xd9   :  { %v585_v6 = vmul.f32 %v577_v4, %v4381_v54  ;;  %1537 = vmatpush.bf16.msra.mxu1 %v2671_v5  ;;  %v2723_v4 = vor.u32 %v3269_v41, %v2720_v52  ;;  %v2958_v5 = vld [vmem:[%s4909_s3 + $0x3c8] sm:$0xf]  ;;  %v3279_v41 = vld [vmem:[%s4909_s3 + $0x234] sm:$0xf0]  ;;  %v3209_v0 = vld [vmem:[%s4909_s3 + $0xc] sm:$0xf] }
  0xda   :  { %1525 = vmatpush.bf16.msra.mxu0 %v2511_v7  ;;  %v2750_v53 = vld [vmem:[%s4909_s3 + $0x228] sm:$0xf]  ;;  %v3311_v10 = vld [vmem:[%s4909_s3 + $0x334] sm:$0xf0]  ;;  %v3245_v12 = vld [vmem:[%s4909_s3 + $0x12c] sm:$0xf] }
  0xdb   :  { %v593_v15 = vadd.f32 %v585_v6, %v4381_v54  ;;  %v3331_v6 = vld [vmem:[%s4909_s3 + $0x3d4] sm:$0xf0]  ;;  %v2751_v63 = vor.u32 %v3279_v41, %v2750_v53  ;;  %v3277_v53 = vld [vmem:[%s4909_s3 + $0x22c] sm:$0xf]  ;;  %v2752_v41 = vld [vmem:[%s4909_s3 + $0x238] sm:$0xf0] }
  0xdc   :  { %1486 = vmatmul.bf16.vlgmr.msrb.gmra.mxu1 %v4346_v31  ;;  %v2959_v18 = vor.u32 %v3331_v6, %v2958_v5  ;;  %v3301_v5 = vld [vmem:[%s4909_s3 + $0x2ec] sm:$0xf]  ;;  %v2848_v6 = vld [vmem:[%s4909_s3 + $0x2f8] sm:$0xf0] }
  0xdd   :  { %v601_v20 = vmul.f32 0.7978846, %v593_v15  ;;  %v3390_v24 = vpop.eup %3389  ;;  %1538 = vmatpush.bf16.msra.mxu1 %v2655_v16  ;;  %v3291_v15 = vld [vmem:[%s4909_s3 + $0x294] sm:$0xf0]  ;;  %v3225_v16 = vld [vmem:[%s4909_s3 + $0x8c] sm:$0xf] }
  0xde   :  { %v616_v55 = vadd.f32 1.0, %v3390_v24  ;;  %v3392_v32 = vpop.eup %3391  ;;  %1526 = vmatpush.bf16.msra.mxu0 %v2495_v21  ;;  %v2799_v21 = vor.u32 %v3291_v15, %v2798_v13  ;;  %v2547_v22 = vor.u32 %v3225_v16, %v2544_v17  ;;  %v3261_v24 = vld [vmem:[%s4909_s3 + $0x1ac] sm:$0xf]  ;;  %v2624_v13 = vld [vmem:[%s4909_s3 + $0x138] sm:$0xf0]  ;;  %v2851_v16 = vor.u32 %v3301_v5, %v2848_v6  ;;  %v3342_v6 = vld [vmem:[%s4911_s5 + $0x30] sm:$0xff] }
  0xdf   :  { %3393 = vtanh.f32 %v601_v20  ;;  %v613_v48 = vadd.f32 1.0, %v3392_v32  ;;  %v2942_v20 = vld [vmem:[%s4909_s3 + $0x3a8] sm:$0xf]  ;;  %v2691_v29 = vor.u32 %v3261_v24, %v2688_v44  ;;  %v2531_v32 = vor.u32 %v3221_v25, %v2528_v51  ;;  %v2608_v24 = vld [vmem:[%s4909_s3 + $0x118] sm:$0xf0] }
  0xe0   :  { %v624_v35 = vmul.f32 %v616_v55, %v560_v27  ;;  %v3287_v27 = vld [vmem:[%s4909_s3 + $0x274] sm:$0xf0]  ;;  %v2943_v55 = vor.u32 %v3327_v23, %v2942_v20  ;;  %v2832_v20 = vld [vmem:[%s4909_s3 + $0x2d8] sm:$0xf0]  ;;  %v3241_v23 = vld [vmem:[%s4909_s3 + $0x10c] sm:$0xf] }
  0xe1   :  { %1539 = vmatpush.bf16.msra.mxu1 %v2639_v30  ;;  %v621_v54 = vmul.f32 %v613_v48, %v557_v58  ;;  %v2926_v30 = vld [vmem:[%s4909_s3 + $0x388] sm:$0xf]  ;;  %v2783_v36 = vor.u32 %v3287_v27, %v2782_v26  ;;  %v2656_v48 = vld [vmem:[%s4909_s3 + $0x178] sm:$0xf0]  ;;  %v3333_v44 = vld [vmem:[%s4909_s3 + $0x3ec] sm:$0xf]  ;;  %v2611_v27 = vor.u32 %v3241_v23, %v2608_v24 }
  0xe2   :  { %v4452_v40 = vpack.c.bf16 %v624_v35, %v620_v34  ;;  %1527 = vmatpush.bf16.msra.mxu0 %v2479_v33  ;;  %v3323_v33 = vld [vmem:[%s4909_s3 + $0x394] sm:$0xf0]  ;;  %v3257_v34 = vld [vmem:[%s4909_s3 + $0x18c] sm:$0xf]  ;;  %v2672_v35 = vld [vmem:[%s4909_s3 + $0x198] sm:$0xf0] }
  0xe3   :  { %v2927_v39 = vor.u32 %v3323_v33, %v2926_v30  ;;  %v2675_v42 = vor.u32 %v3257_v34, %v2672_v35  ;;  %v2894_v58 = vld [vmem:[%s4909_s3 + $0x348] sm:$0xf]  ;;  %v2976_v25 = vld [vmem:[%s4909_s3 + $0x3f8] sm:$0xf0]  ;;  %v3289_v35 = vld [vmem:[%s4909_s3 + $0x28c] sm:$0xf] }
  0xe4   :  { %1444 = vmatmul.bf16.vlgmr.msra.gmra.mxu2 %v4452_v40  ;;  %v2979_v30 = vor.u32 %v3333_v44, %v2976_v25  ;;  %v2960_v33 = vld [vmem:[%s4909_s3 + $0x3d8] sm:$0xf0]  ;;  %v3336_v44 = vld [vmem:[%s4911_s5] sm:$0xff] }
  0xe5   :  { %v3394_v50 = vpop.eup %3393  ;;  %1548 = vmatpush.bf16.msra.mxu2 %v2847_v28  ;;  %1540 = vmatpush.bf16.msra.mxu1 %v2623_v46  ;;  %v2512_v28 = vld [vmem:[%s4909_s3 + $0x58] sm:$0xf0]  ;;  %v3319_v46 = vld [vmem:[%s4909_s3 + $0x374] sm:$0xf0]  ;;  %v3348_v25 = vld [vmem:[%s4911_s5 + $0x60] sm:$0xff] }
  0xe6   :  { %1576 = vmatpush.bf16.msrb.mxu0 %v2595_v37  ;;  %v617_v60 = vadd.f32 1.0, %v3394_v50  ;;  %v2766_v37 = vld [vmem:[%s4909_s3 + $0x248] sm:$0xf]  ;;  %v2515_v45 = vor.u32 %v3217_v57, %v2512_v28  ;;  %v3213_v50 = vld [vmem:[%s4909_s3 + $0x2c] sm:$0xf]  ;;  %v2911_v52 = vor.u32 %v3319_v46, %v2910_v43  ;;  %v3343_v5 = vld [vmem:[%s4911_s5 + $0x38] sm:$0xff] }
  0xe7   :  { %1528 = vmatmul.bf16.vlgmr.msra.gmra.mxu0 %v4310_v2  ;;  %v2767_v14 = vor.u32 %v3283_v38, %v2766_v37  ;;  %v3325_v57 = vld [vmem:[%s4909_s3 + $0x3ac] sm:$0xf]  ;;  %v2944_v28 = vld [vmem:[%s4909_s3 + $0x3b8] sm:$0xf0] }
  0xe8   :  { %v625_v1 = vmul.f32 %v617_v60, %v561_v59  ;;  %v3315_v60 = vld [vmem:[%s4909_s3 + $0x354] sm:$0xf0]  ;;  %v3285_v38 = vld [vmem:[%s4909_s3 + $0x26c] sm:$0xf] }
  0xe9   :  { %1549 = vmatpush.bf16.msra.mxu2 %v2831_v49  ;;  %1541 = vmatpush.bf16.msra.mxu1 %v2607_v11  ;;  %v2496_v49 = vld [vmem:[%s4909_s3 + $0x38] sm:$0xf0]  ;;  %v3321_v43 = vld [vmem:[%s4909_s3 + $0x38c] sm:$0xf] }
  0xea   :  { %1577 = vmatpush.bf16.msrb.mxu0 %v2579_v56  ;;  %v4500_v7 = vpack.c.bf16 %v625_v1, %v621_v54  ;;  %v2659_v56 = vor.u32 %v3253_v47, %v2656_v48  ;;  %v2499_v59 = vor.u32 %v3213_v50, %v2496_v49  ;;  %v2480_v11 = vld [vmem:[%s4909_s3 + $0x18] sm:$0xf0]  ;;  %v2734_v54 = vld [vmem:[%s4909_s3 + $0x208] sm:$0xf]  ;;  %v3275_v1 = vld [vmem:[%s4909_s3 + $0x214] sm:$0xf0] }
  0xeb   :  { %v2735_v15 = vor.u32 %v3275_v1, %v2734_v54  ;;  %v3281_v46 = vld [vmem:[%s4909_s3 + $0x24c] sm:$0xf]  ;;  %v2768_v47 = vld [vmem:[%s4909_s3 + $0x258] sm:$0xf0] }
  0xec   :  { %1458 = vmatmul.bf16.vlgmr.msra.gmra.mxu3 %v4500_v7  ;;  %1542 = vmatmul.bf16.vlgmr.msra.gmra.mxu1 %v4346_v31  ;;  %v2912_v50 = vld [vmem:[%s4909_s3 + $0x378] sm:$0xf0]  ;;  %v2771_v49 = vor.u32 %v3281_v46, %v2768_v47  ;;  %v3305_v1 = vld [vmem:[%s4909_s3 + $0x30c] sm:$0xf] }
  0xed   :  { %1562 = vmatpush.bf16.msra.mxu3 %v2975_v3  ;;  %1590 = vmatpush.bf16.msrb.mxu1 %v2723_v4  ;;  %v2895_v3 = vor.u32 %v3315_v60, %v2894_v58  ;;  %v2643_v4 = vor.u32 %v3249_v61, %v2640_v62  ;;  %v2896_v58 = vld [vmem:[%s4909_s3 + $0x358] sm:$0xf0]  ;;  %v3273_v60 = vld [vmem:[%s4909_s3 + $0x20c] sm:$0xf] }
  0xee   :  { %1550 = vmatpush.bf16.msra.mxu2 %v2815_v8  ;;  %1578 = vmatpush.bf16.msrb.mxu0 %v2563_v9  ;;  %v2878_v8 = vld [vmem:[%s4909_s3 + $0x328] sm:$0xf]  ;;  %v2483_v9 = vor.u32 %v3209_v0, %v2480_v11  ;;  %v2736_v61 = vld [vmem:[%s4909_s3 + $0x218] sm:$0xf0] }
  0xef   :  { %v2879_v17 = vor.u32 %v3311_v10, %v2878_v8  ;;  %v2880_v0 = vld [vmem:[%s4909_s3 + $0x338] sm:$0xf0]  ;;  %v2739_v11 = vor.u32 %v3273_v60, %v2736_v61  ;;  %v3341_v8 = vld [vmem:[%s4911_s5 + $0x28] sm:$0xff] }
  0xf0   :  { %v3339_v10 = vld [vmem:[%s4911_s5 + $0x18] sm:$0xff]  ;;  %v3345_v46 = vld [vmem:[%s4911_s5 + $0x48] sm:$0xff] }
  0xf1   :  { %1563 = vmatpush.bf16.msra.mxu3 %v2959_v18  ;;  %1591 = vmatpush.bf16.msrb.mxu1 %v2707_v19  ;;  %v2627_v18 = vor.u32 %v3245_v12, %v2624_v13  ;;  %v3297_v19 = vld [vmem:[%s4909_s3 + $0x2cc] sm:$0xf]  ;;  %v3351_v12 = vld [vmem:[%s4911_s5 + $0x78] sm:$0xff]  ;;  %v4767_v13 = vld [vmem:[%s4913_s4] sm:$0xf] }
  0xf2   :  { %1551 = vmatpush.bf16.msra.mxu2 %v2799_v21  ;;  %1579 = vmatpush.bf16.msrb.mxu0 %v2547_v22  ;;  %v2862_v21 = vld [vmem:[%s4909_s3 + $0x308] sm:$0xf]  ;;  %v3307_v22 = vld [vmem:[%s4909_s3 + $0x314] sm:$0xf0]  ;;  %v2835_v51 = vor.u32 %v3297_v19, %v2832_v20 }
  0xf3   :  { %v2863_v26 = vor.u32 %v3307_v22, %v2862_v21  ;;  %v3337_v20 = vld [vmem:[%s4911_s5 + $0x8] sm:$0xff] }
  0xf4   :  { %1500 = vmatmul.bf16.vlgmr.msrb.gmra.mxu2 %v4452_v40  ;;  %v3349_v21 = vld [vmem:[%s4911_s5 + $0x68] sm:$0xff] }
  0xf5   :  { %1564 = vmatpush.bf16.msra.mxu3 %v2943_v55  ;;  %1592 = vmatpush.bf16.msrb.mxu1 %v2691_v29  ;;  %v3293_v55 = vld [vmem:[%s4909_s3 + $0x2ac] sm:$0xf]  ;;  %v2816_v29 = vld [vmem:[%s4909_s3 + $0x2b8] sm:$0xf0] }
  0xf6   :  { %1580 = vmatpush.bf16.msrb.mxu0 %v2531_v32  ;;  %1552 = vmatpush.bf16.msra.mxu2 %v2783_v36  ;;  %v3329_v32 = vld [vmem:[%s4909_s3 + $0x3cc] sm:$0xf]  ;;  %v2819_v34 = vor.u32 %v3293_v55, %v2816_v29  ;;  %v3347_v29 = vld [vmem:[%s4911_s5 + $0x58] sm:$0xff] }
  0xf7   :  { %v2963_v36 = vor.u32 %v3329_v32, %v2960_v33  ;;  %v3357_v47 = vld [vmem:[%s4911_s5 + $0xa8] sm:$0xff] }
  0xf9   :  { %1565 = vmatpush.bf16.msra.mxu3 %v2927_v39  ;;  %1593 = vmatpush.bf16.msrb.mxu1 %v2675_v42  ;;  %v2784_v39 = vld [vmem:[%s4909_s3 + $0x278] sm:$0xf0]  ;;  %v2947_v42 = vor.u32 %v3325_v57, %v2944_v28  ;;  %v3346_v57 = vld [vmem:[%s4911_s5 + $0x50] sm:$0xff] }
  0xfa   :  { %1581 = vmatpush.bf16.msrb.mxu0 %v2515_v45  ;;  %1553 = vmatpush.bf16.msra.mxu2 %v2767_v14  ;;  %v2787_v45 = vor.u32 %v3285_v38, %v2784_v39  ;;  %v3317_v14 = vld [vmem:[%s4909_s3 + $0x36c] sm:$0xf]  ;;  %v3358_v28 = vld [vmem:[%s4911_s5 + $0xb0] sm:$0xff] }
  0xfc   :  { %1514 = vmatmul.bf16.vlgmr.msrb.gmra.mxu3 %v4500_v7 }
  0xfd   :  { %1566 = vmatpush.bf16.msra.mxu3 %v2911_v52  ;;  %1594 = vmatpush.bf16.msrb.mxu1 %v2659_v56  ;;  %v2915_v52 = vor.u32 %v3317_v14, %v2912_v50  ;;  %v3313_v56 = vld [vmem:[%s4909_s3 + $0x34c] sm:$0xf] }
  0xfe   :  { %1582 = vmatpush.bf16.msrb.mxu0 %v2499_v59  ;;  %1554 = vmatpush.bf16.msra.mxu2 %v2751_v63  ;;  %v2755_v59 = vor.u32 %v3277_v53, %v2752_v41  ;;  %v2899_v62 = vor.u32 %v3313_v56, %v2896_v58  ;;  %v3309_v63 = vld [vmem:[%s4909_s3 + $0x32c] sm:$0xf]  ;;  %v3356_v56 = vld [vmem:[%s4911_s5 + $0xa0] sm:$0xff] }
  0xff   :  { %v2883_v54 = vor.u32 %v3309_v63, %v2880_v0 }
 0x101   :  { %1567 = vmatpush.bf16.msra.mxu3 %v2895_v3  ;;  %1595 = vmatpush.bf16.msrb.mxu1 %v2643_v4  ;;  %v2864_v3 = vld [vmem:[%s4909_s3 + $0x318] sm:$0xf0] }
 0x102   :  { %1583 = vmatpush.bf16.msrb.mxu0 %v2483_v9  ;;  %1555 = vmatpush.bf16.msra.mxu2 %v2735_v15  ;;  %v2867_v4 = vor.u32 %v3305_v1, %v2864_v3  ;;  %v3338_v15 = vld [vmem:[%s4911_s5 + $0x10] sm:$0xff] }
 0x105   :  { %1568 = vmatpush.bf16.msra.mxu3 %v2879_v17  ;;  %1596 = vmatpush.bf16.msrb.mxu1 %v2627_v18  ;;  %v760_v17 = vperm.slane %v4767_v13, 0 }
 0x106   :  { %1604 = vmatpush.bf16.msrb.mxu2 %v2851_v16  ;;  %1584 = vmatmul.bf16.vlgmr.msrb.gmra.mxu0 %v4310_v2  ;;  %v2800_v2 = vld [vmem:[%s4909_s3 + $0x298] sm:$0xf0]  ;;  %v3350_v16 = vld [vmem:[%s4911_s5 + $0x70] sm:$0xff] }
 0x107   :  { %1556 = vmatmul.bf16.vlgmr.msra.gmra.mxu2 %v4452_v40  ;;  %v2803_v37 = vor.u32 %v3289_v35, %v2800_v2  ;;  %1968 = vmatpush.bf16.msra.mxu0 %v3343_v5 }
 0x109   :  { %1569 = vmatpush.bf16.msra.mxu3 %v2863_v26  ;;  %1597 = vmatpush.bf16.msrb.mxu1 %v2611_v27 }
 0x10a   :  { %1605 = vmatpush.bf16.msrb.mxu2 %v2835_v51 }
 0x10b   :  { %1969 = vmatpush.bf16.msra.mxu0 %v3342_v6  ;;  %v3354_v6 = vld [vmem:[%s4911_s5 + $0x90] sm:$0xff] }
 0x10c   :  { %1598 = vmatmul.bf16.vlgmr.msrb.gmra.mxu1 %v4346_v31  ;;  %1570 = vmatmul.bf16.vlgmr.msra.gmra.mxu3 %v4500_v7  ;;  %v2928_v31 = vld [vmem:[%s4909_s3 + $0x398] sm:$0xf0] }
 0x10d   :  { %1618 = vmatpush.bf16.msrb.mxu3 %v2979_v30  ;;  %v2931_v48 = vor.u32 %v3321_v43, %v2928_v31  ;;  %1982 = vmatpush.bf16.msra.mxu1 %v3351_v12  ;;  %v3359_v30 = vld [vmem:[%s4911_s5 + $0xb8] sm:$0xff] }
 0x10e   :  { %1606 = vmatpush.bf16.msrb.mxu2 %v2819_v34 }
 0x10f   :  { %1970 = vmatpush.bf16.msra.mxu0 %v3341_v8 }
 0x111   :  { %1619 = vmatpush.bf16.msrb.mxu3 %v2963_v36  ;;  %1983 = vmatpush.bf16.msra.mxu1 %v3350_v16 }
 0x112   :  { %1607 = vmatpush.bf16.msrb.mxu2 %v2803_v37  ;;  %v761_v37 = vperm.slane %v4767_v13, 1 }
 0x115   :  { %1620 = vmatpush.bf16.msrb.mxu3 %v2947_v42  ;;  %1984 = vmatpush.bf16.msra.mxu1 %v3349_v21 }
 0x116   :  { %1608 = vmatpush.bf16.msrb.mxu2 %v2787_v45 }
 0x119   :  { %1621 = vmatpush.bf16.msrb.mxu3 %v2931_v48  ;;  %1985 = vmatpush.bf16.msra.mxu1 %v3348_v25 }
 0x11a   :  { %1609 = vmatpush.bf16.msrb.mxu2 %v2771_v49 }
 0x11d   :  { %1622 = vmatpush.bf16.msrb.mxu3 %v2915_v52  ;;  %1986 = vmatpush.bf16.msra.mxu1 %v3347_v29  ;;  %v3344_v52 = vld [vmem:[%s4911_s5 + $0x40] sm:$0xff] }
 0x11e   :  { %1610 = vmatpush.bf16.msrb.mxu2 %v2755_v59 }
 0x121   :  { %1623 = vmatpush.bf16.msrb.mxu3 %v2899_v62  ;;  %1987 = vmatpush.bf16.msra.mxu1 %v3346_v57 }
 0x122   :  { %1611 = vmatpush.bf16.msrb.mxu2 %v2739_v11  ;;  %v3355_v11 = vld [vmem:[%s4911_s5 + $0x98] sm:$0xff] }
 0x125   :  { %1624 = vmatpush.bf16.msrb.mxu3 %v2883_v54  ;;  %1612 = vmatmul.bf16.vlgmr.msrb.gmra.mxu2 %v4452_v40  ;;  %v3340_v40 = vld [vmem:[%s4911_s5 + $0x20] sm:$0xff] }
 0x126   :  { %1971 = vmatpush.bf16.msra.mxu0 %v3340_v40  ;;  %1996 = vmatpush.bf16.msra.mxu2 %v3359_v30 }
 0x127   :  { %1988 = vmatpush.bf16.msra.mxu1 %v3345_v46 }
 0x129   :  { %1625 = vmatpush.bf16.msrb.mxu3 %v2867_v4 }
 0x12a   :  { %1972 = vmatpush.bf16.msra.mxu0 %v3339_v10  ;;  %1997 = vmatpush.bf16.msra.mxu2 %v3358_v28  ;;  %v762_v10 = vperm.slane %v4767_v13, 2 }
 0x12b   :  { %1989 = vmatpush.bf16.msra.mxu1 %v3344_v52 }
 0x12c   :  { %1626 = vmatmul.bf16.vlgmr.msrb.gmra.mxu3 %v4500_v7 }
 0x12e   :  { %1973 = vmatpush.bf16.msra.mxu0 %v3338_v15  ;;  %1998 = vmatpush.bf16.msra.mxu2 %v3357_v47  ;;  %v3353_v15 = vld [vmem:[%s4911_s5 + $0x88] sm:$0xff] }
 0x12f   :  { %v3365_v47 = vld [vmem:[%s4911_s5 + $0xe8] sm:$0xff] }
 0x132   :  { %1974 = vmatpush.bf16.msra.mxu0 %v3337_v20  ;;  %1999 = vmatpush.bf16.msra.mxu2 %v3356_v56  ;;  %v3364_v56 = vld [vmem:[%s4911_s5 + $0xe0] sm:$0xff] }
 0x136   :  { %1975 = vmatpush.bf16.msra.mxu0 %v3336_v44  ;;  %2000 = vmatpush.bf16.msra.mxu2 %v3355_v11 }
 0x13a   :  { %2001 = vmatpush.bf16.msra.mxu2 %v3354_v6  ;;  %v3362_v6 = vld [vmem:[%s4911_s5 + $0xd0] sm:$0xff] }
 0x13e   :  { %2002 = vmatpush.bf16.msra.mxu2 %v3353_v15 }
 0x142   :  { %v1417_v7 = vpop.f32.mrf.mxu0 }
 0x143   :  { %v1418_v22 = vadd.f32 %v1417_v7, %v760_v17 }
 0x149   :  { %v1431_v9 = vpop.f32.mrf.mxu1 }
 0x14a   :  { %v1419_v18 = vpop.f32.mrf.mxu0  ;;  %v1432_v24 = vadd.f32 %v1431_v9, %v1418_v22 }
 0x14b   :  { %v1420_v32 = vadd.f32 %v1419_v18, %v760_v17 }
 0x151   :  { %v1433_v23 = vpop.f32.mrf.mxu1 }
 0x152   :  { %v1473_v33 = vpop.f32.mrf.mxu0  ;;  %v1434_v35 = vadd.f32 %v1433_v23, %v1420_v32  ;;  %v3352_v32 = vld [vmem:[%s4911_s5 + $0x80] sm:$0xff] }
 0x153   :  { %v1474_v48 = vadd.f32 %v1473_v33, %v761_v37  ;;  %v3367_v33 = vld [vmem:[%s4911_s5 + $0xf8] sm:$0xff]  ;;  %2003 = vmatpush.bf16.msra.mxu2 %v3352_v32 }
 0x154   :  { %2010 = vmatpush.bf16.msra.mxu3 %v3367_v33 }
 0x159   :  { %v1487_v2 = vpop.f32.mrf.mxu1 }
 0x15a   :  { %v1488_v50 = vadd.f32 %v1487_v2, %v1474_v48  ;;  %v1475_v49 = vpop.f32.mrf.mxu0 }
 0x15b   :  { %v1476_v54 = vadd.f32 %v1475_v49, %v761_v37  ;;  %v3366_v37 = vld [vmem:[%s4911_s5 + $0xf0] sm:$0xff] }
 0x15c   :  { %2011 = vmatpush.bf16.msra.mxu3 %v3366_v37 }
 0x160   :  { %2012 = vmatpush.bf16.msra.mxu3 %v3365_v47 }
 0x161   :  { %v1489_v58 = vpop.f32.mrf.mxu1 }
 0x162   :  { %v1490_v4 = vadd.f32 %v1489_v58, %v1476_v54 }
 0x164   :  { %v1529_v40 = vpop.f32.mrf.mxu0  ;;  %2013 = vmatpush.bf16.msra.mxu3 %v3364_v56  ;;  %v3370_v56 = vld [vmem:[%s4915_s7 + $0x10] sm:$0xff] }
 0x165   :  { %v1530_v23 = vadd.f32 %v1529_v40, %v762_v10  ;;  %v763_v40 = vperm.slane %v4767_v13, 3 }
 0x167   :  { %v1445_v19 = vpop.f32.mrf.mxu2 }
 0x168   :  { %v1446_v51 = vadd.f32 %v1445_v19, %v1432_v24 }
 0x169   :  { %v1543_v16 = vpop.f32.mrf.mxu1 }
 0x16f   :  { %v1459_v26 = vpop.f32.mrf.mxu3  ;;  %v1447_v55 = vpop.f32.mrf.mxu2 }
 0x170   :  { %v4788_v27 = vadd.f32 %v1459_v26, %v1446_v51  ;;  %v1448_v39 = vadd.f32 %v1447_v55, %v1434_v35  ;;  %v1544_v55 = vadd.f32 %v1543_v16, %v1530_v23 }
 0x172   :  { %v1640_v34 = vmul.f32 0.044715, %v4788_v27  ;;  %v1632_v24 = vmul.f32 0.5, %v4788_v27 }
 0x174   :  { %v1648_v36 = vmul.f32 %v1640_v34, %v4788_v27 }
 0x176   :  { %v1656_v38 = vmul.f32 %v1648_v36, %v4788_v27 }
 0x177   :  { %v1461_v42 = vpop.f32.mrf.mxu3  ;;  %v1501_v45 = vpop.f32.mrf.mxu2 }
 0x178   :  { %v1664_v43 = vadd.f32 %v1656_v38, %v4788_v27  ;;  %v1462_v31 = vadd.f32 %v1461_v42, %v1448_v39  ;;  %v1502_v60 = vadd.f32 %v1501_v45, %v1488_v50  ;;  %v1531_v27 = vpop.f32.mrf.mxu0  ;;  %v1545_v38 = vpop.f32.mrf.mxu1 }
 0x179   :  { %v1532_v42 = vadd.f32 %v1531_v27, %v762_v10 }
 0x17a   :  { %v1644_v14 = vmul.f32 0.044715, %v1462_v31  ;;  %v1672_v53 = vmul.f32 0.7978846, %v1664_v43  ;;  %v1636_v44 = vmul.f32 0.5, %v1462_v31 }
 0x17b   :  { %v1546_v45 = vadd.f32 %v1545_v38, %v1532_v42 }
 0x17c   :  { %v1652_v41 = vmul.f32 %v1644_v14, %v1462_v31  ;;  %3395 = vtanh.f32 %v1672_v53 }
 0x17e   :  { %v1660_v59 = vmul.f32 %v1652_v41, %v1462_v31 }
 0x17f   :  { %v1515_v61 = vpop.f32.mrf.mxu3  ;;  %v1503_v0 = vpop.f32.mrf.mxu2 }
 0x180   :  { %v1668_v62 = vadd.f32 %v1660_v59, %v1462_v31  ;;  %v4819_v63 = vadd.f32 %v1515_v61, %v1502_v60  ;;  %v1504_v9 = vadd.f32 %v1503_v0, %v1490_v4 }
 0x182   :  { %v1676_v1 = vmul.f32 0.7978846, %v1668_v62  ;;  %v1641_v3 = vmul.f32 0.044715, %v4819_v63  ;;  %v3396_v8 = vpop.eup %3395  ;;  %v1633_v60 = vmul.f32 0.5, %v4819_v63 }
 0x183   :  { %v1688_v19 = vadd.f32 1.0, %v3396_v8 }
 0x184   :  { %v1649_v5 = vmul.f32 %v1641_v3, %v4819_v63  ;;  %3397 = vtanh.f32 %v1676_v1  ;;  %v3363_v3 = vld [vmem:[%s4911_s5 + $0xd8] sm:$0xff] }
 0x185   :  { %v1696_v29 = vmul.f32 %v1688_v19, %v1632_v24  ;;  %2014 = vmatpush.bf16.msra.mxu3 %v3363_v3 }
 0x186   :  { %v1657_v7 = vmul.f32 %v1649_v5, %v4819_v63 }
 0x187   :  { %v1517_v12 = vpop.f32.mrf.mxu3 }
 0x188   :  { %v1665_v17 = vadd.f32 %v1657_v7, %v4819_v63  ;;  %v1518_v18 = vadd.f32 %v1517_v12, %v1504_v9  ;;  %v1585_v63 = vpop.f32.mrf.mxu0  ;;  %v3361_v9 = vld [vmem:[%s4911_s5 + $0xc8] sm:$0xff] }
 0x189   :  { %2015 = vmatpush.bf16.msra.mxu3 %v3362_v6  ;;  %v1599_v10 = vpop.f32.mrf.mxu1  ;;  %v1586_v16 = vadd.f32 %v1585_v63, %v763_v40 }
 0x18a   :  { %v3398_v20 = vpop.eup %3397  ;;  %v1645_v21 = vmul.f32 0.044715, %v1518_v18  ;;  %v1557_v22 = vpop.f32.mrf.mxu2  ;;  %v1673_v51 = vmul.f32 0.7978846, %v1665_v17  ;;  %v1637_v61 = vmul.f32 0.5, %v1518_v18  ;;  %v3360_v17 = vld [vmem:[%s4911_s5 + $0xc0] sm:$0xff] }
 0x18b   :  { %v1692_v25 = vadd.f32 1.0, %v3398_v20  ;;  %v1558_v35 = vadd.f32 %v1557_v22, %v1544_v55 }
 0x18c   :  { %v1653_v26 = vmul.f32 %v1645_v21, %v1518_v18  ;;  %3399 = vtanh.f32 %v1673_v51 }
 0x18d   :  { %v1700_v30 = vmul.f32 %v1692_v25, %v1636_v44  ;;  %2016 = vmatpush.bf16.msra.mxu3 %v3361_v9 }
 0x18e   :  { %v1661_v34 = vmul.f32 %v1653_v26, %v1518_v18 }
 0x18f   :  { %v1704_v2 = vpack.c.bf16 %v1700_v30, %v1696_v29  ;;  %v1571_v57 = vpop.f32.mrf.mxu3 }
 0x190   :  { %v1669_v36 = vadd.f32 %v1661_v34, %v1518_v18  ;;  %v1572_v28 = vadd.f32 %v1571_v57, %v1558_v35  ;;  %v1600_v18 = vadd.f32 %v1599_v10, %v1586_v16  ;;  %v1587_v21 = vpop.f32.mrf.mxu0 }
 0x191   :  { %1976 = vmatmul.bf16.vlgmr.msra.gmra.mxu0 %v1704_v2  ;;  %2017 = vmatpush.bf16.msra.mxu3 %v3360_v17  ;;  %v1601_v51 = vpop.f32.mrf.mxu1  ;;  %v1588_v29 = vadd.f32 %v1587_v21, %v763_v40 }
 0x192   :  { %v1677_v39 = vmul.f32 0.7978846, %v1669_v36  ;;  %v1642_v43 = vmul.f32 0.044715, %v1572_v28  ;;  %v1559_v31 = vpop.f32.mrf.mxu2  ;;  %v3400_v48 = vpop.eup %3399  ;;  %v1634_v23 = vmul.f32 0.5, %v1572_v28 }
 0x193   :  { %v1560_v50 = vadd.f32 %v1559_v31, %v1546_v45  ;;  %v1689_v52 = vadd.f32 1.0, %v3400_v48  ;;  %v1602_v34 = vadd.f32 %v1601_v51, %v1588_v29 }
 0x194   :  { %3401 = vtanh.f32 %v1677_v39  ;;  %v1650_v46 = vmul.f32 %v1642_v43, %v1572_v28 }
 0x195   :  { %v1697_v54 = vmul.f32 %v1689_v52, %v1633_v60  ;;  %v3371_v52 = vld [vmem:[%s4915_s7 + $0x18] sm:$0xff] }
 0x196   :  { %v1658_v14 = vmul.f32 %v1650_v46, %v1572_v28  ;;  %2087 = vmatpush.bf16.msrb.mxu0 %v3371_v52  ;;  %v3375_v52 = vld [vmem:[%s4916_s9 + $0x18] sm:$0xff] }
 0x197   :  { %v1573_v49 = vpop.f32.mrf.mxu3  ;;  %2188 = vmatpush.bf16.msrb.mxu1 %v3375_v52 }
 0x198   :  { %v1666_v53 = vadd.f32 %v1658_v14, %v1572_v28  ;;  %v1574_v41 = vadd.f32 %v1573_v49, %v1560_v50 }
 0x19a   :  { %v3402_v58 = vpop.eup %3401  ;;  %v1646_v59 = vmul.f32 0.044715, %v1574_v41  ;;  %v1674_v0 = vmul.f32 0.7978846, %v1666_v53  ;;  %v1638_v24 = vmul.f32 0.5, %v1574_v41  ;;  %2088 = vmatpush.bf16.msrb.mxu0 %v3370_v56  ;;  %v3374_v56 = vld [vmem:[%s4916_s9 + $0x10] sm:$0xff] }
 0x19b   :  { %v1693_v62 = vadd.f32 1.0, %v3402_v58  ;;  %2189 = vmatpush.bf16.msrb.mxu1 %v3374_v56 }
 0x19c   :  { %v1654_v11 = vmul.f32 %v1646_v59, %v1574_v41  ;;  %3403 = vtanh.f32 %v1674_v0  ;;  %v3377_v59 = vld [vmem:[%s4912_s6] ss:$0 sm:$0xff] }
 0x19d   :  { %v1701_v1 = vmul.f32 %v1693_v62, %v1637_v61  ;;  %v3369_v61 = vld [vmem:[%s4915_s7 + $0x8] sm:$0xff] }
 0x19e   :  { %v1662_v4 = vmul.f32 %v1654_v11, %v1574_v41  ;;  %2089 = vmatpush.bf16.msrb.mxu0 %v3369_v61  ;;  %v3368_v11 = vld [vmem:[%s4915_s7] sm:$0xff] }
 0x19f   :  { %v1705_v5 = vpack.c.bf16 %v1701_v1, %v1697_v54 }
 0x1a0   :  { %v1670_v8 = vadd.f32 %v1662_v4, %v1574_v41 }
 0x1a1   :  { %1990 = vmatmul.bf16.vlgmr.msra.gmra.mxu1 %v1705_v5 }
 0x1a2   :  { %v1678_v7 = vmul.f32 0.7978846, %v1670_v8  ;;  %v3404_v15 = vpop.eup %3403  ;;  %2090 = vmatpush.bf16.msrb.mxu0 %v3368_v11 }
 0x1a3   :  { %v1690_v19 = vadd.f32 1.0, %v3404_v15 }
 0x1a4   :  { %3405 = vtanh.f32 %v1678_v7 }
 0x1a5   :  { %v1698_v26 = vmul.f32 %v1690_v19, %v1634_v23 }
 0x1a8   :  { %v1613_v12 = vpop.f32.mrf.mxu2 }
 0x1a9   :  { %v1614_v13 = vadd.f32 %v1613_v12, %v1600_v18 }
 0x1aa   :  { %v3406_v20 = vpop.eup %3405 }
 0x1ab   :  { %v1694_v44 = vadd.f32 1.0, %v3406_v20 }
 0x1ad   :  { %v1702_v55 = vmul.f32 %v1694_v44, %v1638_v24 }
 0x1af   :  { %v1627_v22 = vpop.f32.mrf.mxu3  ;;  %v1706_v33 = vpack.c.bf16 %v1702_v55, %v1698_v26 }
 0x1b0   :  { %v1628_v25 = vadd.f32 %v1627_v22, %v1614_v13  ;;  %v1615_v32 = vpop.f32.mrf.mxu2 }
 0x1b1   :  { %2004 = vmatmul.bf16.vlgmr.msra.gmra.mxu2 %v1706_v33  ;;  %v1616_v27 = vadd.f32 %v1615_v32, %v1602_v34  ;;  %v3378_v32 = vld [vmem:[%s4914_s8] ss:$0 sm:$0xff] }
 0x1b2   :  { %v1643_v30 = vmul.f32 0.044715, %v1628_v25  ;;  %v1635_v48 = vmul.f32 0.5, %v1628_v25 }
 0x1b4   :  { %v1651_v35 = vmul.f32 %v1643_v30, %v1628_v25 }
 0x1b6   :  { %v1659_v2 = vmul.f32 %v1651_v35, %v1628_v25 }
 0x1b7   :  { %v1629_v36 = vpop.f32.mrf.mxu3 }
 0x1b8   :  { %v1667_v57 = vadd.f32 %v1659_v2, %v1628_v25  ;;  %v1630_v37 = vadd.f32 %v1629_v36, %v1616_v27 }
 0x1ba   :  { %v1647_v38 = vmul.f32 0.044715, %v1630_v37  ;;  %v1675_v28 = vmul.f32 0.7978846, %v1667_v57  ;;  %v1639_v14 = vmul.f32 0.5, %v1630_v37  ;;  %v3421_v57 = vmov 64.0  }
 0x1bc   :  { %v1655_v39 = vmul.f32 %v1647_v38, %v1630_v37  ;;  %3407 = vtanh.f32 %v1675_v28 }
 0x1be   :  { %v1663_v42 = vmul.f32 %v1655_v39, %v1630_v37 }
 0x1c0   :  { %v1671_v43 = vadd.f32 %v1663_v42, %v1630_v37 }
 0x1c2   :  { %v1679_v31 = vmul.f32 0.7978846, %v1671_v43  ;;  %v3408_v45 = vpop.eup %3407 }
 0x1c3   :  { %v1691_v46 = vadd.f32 1.0, %v3408_v45 }
 0x1c4   :  { %3409 = vtanh.f32 %v1679_v31 }
 0x1c5   :  { %v1699_v49 = vmul.f32 %v1691_v46, %v1635_v48 }
 0x1ca   :  { %v3410_v47 = vpop.eup %3409 }
 0x1cb   :  { %v1695_v50 = vadd.f32 1.0, %v3410_v47 }
 0x1cd   :  { %v1703_v53 = vmul.f32 %v1695_v50, %v1639_v14 }
 0x1cf   :  { %v1707_v41 = vpack.c.bf16 %v1703_v53, %v1699_v49 }
 0x1d1   :  { %2018 = vmatmul.bf16.vlgmr.msra.gmra.mxu3 %v1707_v41 }
 0x20e   :  { %v1977_v58 = vpop.f32.mrf.mxu0 }
 0x20f   :  { %v1978_v0 = vadd.f32 %v3377_v59, %v1977_v58  ;;  %v3373_v58 = vld [vmem:[%s4916_s9 + $0x8] sm:$0xff] }
 0x210   :  { %2190 = vmatpush.bf16.msrb.mxu1 %v3373_v58 }
 0x216   :  { %v1979_v3 = vpop.f32.mrf.mxu0 }
 0x217   :  { %v1980_v8 = vadd.f32 %v3377_v59, %v1979_v3  ;;  %v3372_v59 = vld [vmem:[%s4916_s9] sm:$0xff] }
 0x218   :  { %2191 = vmatpush.bf16.msrb.mxu1 %v3372_v59 }
 0x21e   :  { %v1991_v60 = vpop.f32.mrf.mxu1 }
 0x21f   :  { %v1992_v54 = vadd.f32 %v1991_v60, %v1978_v0 }
 0x226   :  { %v1993_v6 = vpop.f32.mrf.mxu1 }
 0x227   :  { %v1994_v7 = vadd.f32 %v1993_v6, %v1980_v8 }
 0x234   :  { %v2005_v62 = vpop.f32.mrf.mxu2 }
 0x235   :  { %v2006_v1 = vadd.f32 %v2005_v62, %v1992_v54 }
 0x23c   :  { %v2007_v40 = vpop.f32.mrf.mxu2 }
 0x23d   :  { %v2008_v10 = vadd.f32 %v2007_v40, %v1994_v7 }
 0x254   :  { %v2019_v4 = vpop.f32.mrf.mxu3 }
 0x255   :  { %v2020_v5 = vadd.f32 %v2019_v4, %v2006_v1 }
 0x257   :  { %v2026_v63 = vmul.f32 0.044715, %v2020_v5  ;;  %v2024_v25 = vmul.f32 0.5, %v2020_v5 }
 0x259   :  { %v2028_v9 = vmul.f32 %v2026_v63, %v2020_v5 }
 0x25b   :  { %v2030_v12 = vmul.f32 %v2028_v9, %v2020_v5 }
 0x25c   :  { %v2021_v15 = vpop.f32.mrf.mxu3 }
 0x25d   :  { %v2032_v16 = vadd.f32 %v2030_v12, %v2020_v5  ;;  %v2022_v17 = vadd.f32 %v2021_v15, %v2008_v10 }
 0x25f   :  { %v2027_v18 = vmul.f32 0.044715, %v2022_v17  ;;  %v2034_v19 = vmul.f32 0.7978846, %v2032_v16  ;;  %v2025_v51 = vmul.f32 0.5, %v2022_v17 }
 0x261   :  { %v2029_v20 = vmul.f32 %v2027_v18, %v2022_v17  ;;  %3411 = vtanh.f32 %v2034_v19 }
 0x263   :  { %v2031_v13 = vmul.f32 %v2029_v20, %v2022_v17 }
 0x265   :  { %v2033_v21 = vadd.f32 %v2031_v13, %v2022_v17 }
 0x267   :  { %v2035_v22 = vmul.f32 0.7978846, %v2033_v21  ;;  %v3412_v23 = vpop.eup %3411 }
 0x268   :  { %v2038_v24 = vadd.f32 1.0, %v3412_v23 }
 0x269   :  { %3413 = vtanh.f32 %v2035_v22 }
 0x26a   :  { %v2040_v55 = vmul.f32 %v2038_v24, %v2024_v25  ;;  %3415 = vrcp.f32 %v3421_v57 }
 0x26f   :  { %v3414_v44 = vpop.eup %3413 }
 0x270   :  { %v2039_v26 = vadd.f32 1.0, %v3414_v44  ;;  %v3416_v37 = vpop.eup %3415 }
 0x271   :  { %v2104_v38 = vmul.f32 64.0, %v3416_v37  ;;  %vm2108_vm1 = vweird.f32 %v3416_v37 }
 0x272   :  { %v2041_v29 = vmul.f32 %v2039_v26, %v2025_v51 }
 0x273   :  { %v2105_v28 = vsub.f32 1.0, %v2104_v38 }
 0x274   :  { %v2042_v30 = vpack.c.bf16 %v2041_v29, %v2040_v55 }
 0x275   :  { %v2106_v39 = vmul.f32 %v3416_v37, %v2105_v28 }
 0x276   :  { %3124 = vmatmul.msk.bf16.vlgmr.msrb.gmra.mxu0 %vm2079_vm0, %v2042_v30 }
 0x277   :  { %v2107_v42 = vadd.f32 %v3416_v37, %v2106_v39 }
 0x279   :  { %v2109_v43 = vsel %vm2108_vm1, %v3416_v37, %v2107_v42 }
 0x2f3   :  { %v2092_v33 = vpop.f32.mrf.mxu0 }
 0x2f4   :  { %v2093_v34 = vadd.f32 %v3378_v32, %v2092_v33 }
 0x2f6   :  { %v2097_v35 = vsel %vm2079_vm0, %v2093_v34, 0.0 }
 0x2f7   :  { %2098 = vadd.xlane.f32.xlu0 %v2097_v35 }
 0x2fb   :  { %v2094_v2 = vpop.f32.mrf.mxu0 }
 0x2fc   :  { %v2095_v27 = vadd.f32 %v3378_v32, %v2094_v2 }
 0x2fe   :  { %v2100_v36 = vsel %vm2079_vm0, %v2095_v27, 0.0 }
 0x2ff   :  { %2101 = vadd.xlane.f32.xlu0 %v2100_v36 }
 0x36a   :  { %v2099_v31 = vpop.xlane.xlu0 %2098 }
 0x36b   :  { %v2110_v45 = vmul.f32 %v2109_v43, %v2099_v31 }
 0x36d   :  { %v2112_v46 = vsub.f32 %v2093_v34, %v2110_v45 }
 0x36f   :  { %v2114_v47 = vmul.f32 %v2112_v46, %v2112_v46 }
 0x371   :  { %v2116_v48 = vsel %vm2079_vm0, %v2114_v47, 0.0 }
 0x372   :  { %2117 = vadd.xlane.f32.xlu1 %v2116_v48  ;;  %v2102_v14 = vpop.xlane.xlu0 %2101 }
 0x373   :  { %v2111_v50 = vmul.f32 %v2109_v43, %v2102_v14 }
 0x375   :  { %v2113_v49 = vsub.f32 %v2095_v27, %v2111_v50 }
 0x377   :  { %v2115_v53 = vmul.f32 %v2113_v49, %v2113_v49 }
 0x379   :  { %v2119_v41 = vsel %vm2079_vm0, %v2115_v53, 0.0 }
 0x37a   :  { %2120 = vadd.xlane.f32.xlu1 %v2119_v41 }
 0x3e5   :  { %v2118_v60 = vpop.xlane.xlu1 %2117 }
 0x3e6   :  { %v2122_v61 = vmul.f32 %v2118_v60, %v2109_v43 }
 0x3e8   :  { %v2124_v62 = vadd.f32 1e-05, %v2122_v61 }
 0x3ea   :  { %3417 = vrsqrt.f32 %v2124_v62  ;;  %vm2132_vm3 = vweird.f32 %v2124_v62 }
 0x3ed   :  { %v2121_v0 = vpop.xlane.xlu1 %2120 }
 0x3ee   :  { %v2123_v11 = vmul.f32 %v2121_v0, %v2109_v43 }
 0x3f0   :  { %v3418_v54 = vpop.eup %3417  ;;  %v2125_v1 = vadd.f32 1e-05, %v2123_v11 }
 0x3f1   :  { %v2127_v3 = vmul.f32 %v3418_v54, %v2124_v62  ;;  %vm2133_vm2 = vweird.f32 %v3418_v54 }
 0x3f2   :  { %3419 = vrsqrt.f32 %v2125_v1  ;;  %vm2134_vm5 = vmor %vm2132_vm3, %vm2133_vm2  ;;  %vm2142_vm6 = vweird.f32 %v2125_v1 }
 0x3f3   :  { %v2128_v4 = vmul.f32 %v3418_v54, %v2127_v3 }
 0x3f5   :  { %v2129_v5 = vmul.f32 0.5, %v2128_v4 }
 0x3f7   :  { %v2130_v8 = vsub.f32 1.5, %v2129_v5 }
 0x3f8   :  { %v3420_v6 = vpop.eup %3419 }
 0x3f9   :  { %v2137_v63 = vmul.f32 %v3420_v6, %v2125_v1  ;;  %v2131_v7 = vmul.f32 %v3418_v54, %v2130_v8  ;;  %vm2143_vm4 = vweird.f32 %v3420_v6 }
 0x3fa   :  { %vm2144_vm7 = vmor %vm2142_vm6, %vm2143_vm4 }
 0x3fb   :  { %v2138_v40 = vmul.f32 %v3420_v6, %v2137_v63  ;;  %v2135_v12 = vsel %vm2134_vm5, %v3418_v54, %v2131_v7 }
 0x3fc   :  { %v2146_v17 = vmul.f32 %v2135_v12, %v2112_v46 }
 0x3fd   :  { %v2139_v9 = vmul.f32 0.5, %v2138_v40 }
 0x3ff   :  { %v2140_v10 = vsub.f32 1.5, %v2139_v9 }
 0x401   :  { %v2141_v15 = vmul.f32 %v3420_v6, %v2140_v10 }
 0x403   :  { %v2145_v16 = vsel %vm2144_vm7, %v3420_v6, %v2141_v15 }
 0x404   :  { %v2147_v18 = vmul.f32 %v2145_v16, %v2113_v49 }
 0x406   :  { %v2148_v19 = vpack.c.bf16 %v2147_v18, %v2146_v17 }
 0x408   :  { %3141 = vmatmul.msk.bf16.vlgmr.msrb.gmra.mxu1 %vm2079_vm0, %v2148_v19 }
 0x485   :  { %v2193_v20 = vpop.f32.mrf.mxu1 }
 0x486   :  { %2198 = vst [vmem:[%s4917_s10] sm:$0xff] %v2193_v20 }
 0x48d   :  { %v2195_v13 = vpop.f32.mrf.mxu1 }
 0x48e   :  { %2199 = vst [vmem:[%s4917_s10 + $0x8] sm:$0xff] %v2195_v13 }

</bundles_post_ra>
